<compile_context>
chip_gen: v5e
topology: v5e:2x2
jax: 0.10.0
libtpu: 0.0.40
codegen_flags: <defaults>
</compile_context>

<pallas_src>
import functools

import jax
import jax.numpy as jnp
from jax.experimental import pallas as pl
from jax.experimental.pallas import tpu as pltpu

FEATURE_DIM = 2048


def _round_up(x, m):
    return pl.cdiv(x, m) * m


def _tpu_kind():
    try:
        return jax.devices()[0].device_kind.lower()
    except Exception:
        return ""


def _default_stem_channels():
    kind = _tpu_kind()
    if ("v4" in kind) or ("v5" in kind):
        return 128          # 128-wide MXU already full; K=256 would double passes
    if ("v6" in kind) or ("v7" in kind) or ("tpu7" in kind):
        return 256          # fill the 256-wide MXU contraction for free
    return 128              # conservative fallback


def _default_feature_blocks():
    kind = _tpu_kind()
    # Only v7x has 2 TensorCores per chip; elsewhere the split just adds
    # grid-step overhead and duplicate patch DMA.
    return 2 if (("v7" in kind) or ("tpu7" in kind)) else 1


# ----------------------------------------------------------------------------
# Fused Pallas kernel: conv3x3(im2col matmul) + ReLU -> conv1x1 + ReLU -> GAP
# Grid: (batch, feature_blocks, hw_tiles); batch & feature axes "parallel",
# HW axis "arbitrary" with a [1, f_blk] f32 VMEM accumulator.
# ----------------------------------------------------------------------------
def _fused_features_kernel(p_ref, w1_ref, b1_ref, w2_ref, b2_ref,
                           o_ref, acc_ref, *, hw_total, tile_hw, need_mask):
    hw = pl.program_id(2)

    @pl.when(hw == 0)
    def _():
        acc_ref[...] = jnp.zeros_like(acc_ref)

    # Stage 1: 3x3 conv (as im2col matmul) + bias + ReLU. bf16 MXU, f32 acc.
    h1 = jnp.dot(p_ref[...], w1_ref[...], preferred_element_type=jnp.float32)
    h1 = jnp.maximum(h1 + b1_ref[...], 0.0)

    # Stage 2: 1x1 conv to the feature block + bias + ReLU. bf16 MXU, f32 acc.
    h2 = jnp.dot(h1.astype(w2_ref.dtype), w2_ref[...],
                 preferred_element_type=jnp.float32)
    h2 = jnp.maximum(h2 + b2_ref[...], 0.0)

    # Global-average-pool partial sum, offloaded to the MXU: ones-row matmul.
    # Padded HW rows (if any) are dropped by zeroing their weight in the ones
    # vector — O(tile_hw) VALU work instead of O(tile_hw * 2048).
    if need_mask:
        col = jax.lax.broadcasted_iota(jnp.int32, (1, tile_hw), 1) + hw * tile_hw
        ones_row = jnp.where(col < hw_total, 1.0, 0.0).astype(jnp.bfloat16)
    else:
        ones_row = jnp.ones((1, tile_hw), jnp.bfloat16)
    acc_ref[...] += jnp.dot(ones_row, h2.astype(jnp.bfloat16),
                            preferred_element_type=jnp.float32)

    @pl.when(hw == pl.num_programs(2) - 1)
    def _():
        o_ref[...] = (acc_ref[...] * (1.0 / hw_total)).astype(o_ref.dtype)


def fused_conv_conv_gap(patches, w1, b1, w2, b2, *, hw_total, tile_hw,
                        feature_blocks=1, vmem_limit_bytes=None):
    """patches: [N, HW_pad, K] bf16 -> pooled features [N, FEATURE_DIM] f32."""
    N, hw_pad, K = patches.shape
    stem = w1.shape[1]
    assert hw_pad % tile_hw == 0
    assert FEATURE_DIM % feature_blocks == 0
    f_blk = FEATURE_DIM // feature_blocks

    kernel = functools.partial(
        _fused_features_kernel,
        hw_total=hw_total,
        tile_hw=tile_hw,
        need_mask=(hw_pad != hw_total),
    )
    out = pl.pallas_call(
        kernel,
        out_shape=jax.ShapeDtypeStruct((N, 1, FEATURE_DIM), jnp.float32),
        grid=(N, feature_blocks, hw_pad // tile_hw),
        in_specs=[
            # Per-(batch, hw-tile) patch block; batch dim squeezed out.
            pl.BlockSpec((None, tile_hw, K), lambda b, f, hw: (b, hw, 0)),
            # Weights / biases: small, resident in VMEM across the HW loop.
            pl.BlockSpec((K, stem), lambda b, f, hw: (0, 0)),
            pl.BlockSpec((1, stem), lambda b, f, hw: (0, 0)),
            pl.BlockSpec((stem, f_blk), lambda b, f, hw: (0, f)),
            pl.BlockSpec((1, f_blk), lambda b, f, hw: (0, f)),
        ],
        out_specs=pl.BlockSpec((None, 1, f_blk), lambda b, f, hw: (b, 0, f)),
        scratch_shapes=[pltpu.VMEM((1, f_blk), jnp.float32)],
        compiler_params=pltpu.CompilerParams(
            dimension_semantics=("parallel", "parallel", "arbitrary"),
            vmem_limit_bytes=vmem_limit_bytes,
        ),
    )(patches, w1, b1, w2, b2)
    return out.reshape(N, FEATURE_DIM)


# ----------------------------------------------------------------------------
# Glue (layout conversion, im2col, parameter construction) — plain JAX
# ----------------------------------------------------------------------------
def _im2col_3x3_same(x_nhwc):
    """[N, H, W, C] -> [N, H*W, 9*C] patches for a 3x3 same-padding conv."""
    N, H, W, C = x_nhwc.shape
    xp = jnp.pad(x_nhwc, ((0, 0), (1, 1), (1, 1), (0, 0)))
    patches = []
    for dh in range(3):
        for dw in range(3):
            patches.append(xp[:, dh:dh + H, dw:dw + W, :])
    return jnp.concatenate(patches, axis=-1).reshape(N, H * W, 9 * C)


def init_params(key, in_channels=3, stem_channels=None):
    if stem_channels is None:
        stem_channels = _default_stem_channels()
    k1, k2, k3, k4 = jax.random.split(key, 4)
    k_raw = 9 * in_channels
    k_pad = _round_up(k_raw, 32)          # pad im2col contraction dim (27->32)
    w1 = jax.random.normal(k1, (k_raw, stem_channels), jnp.float32)
    w1 = w1 / jnp.sqrt(jnp.float32(k_raw))
    w1 = jnp.pad(w1, ((0, k_pad - k_raw), (0, 0)))   # zero rows for padded K
    w2 = jax.random.normal(k3, (stem_channels, FEATURE_DIM), jnp.float32)
    w2 = w2 / jnp.sqrt(jnp.float32(stem_channels))
    return {
        "w1": w1.astype(jnp.bfloat16),
        "b1": jax.random.normal(k2, (stem_channels,), jnp.float32) * 0.01,
        "w2": w2.astype(jnp.bfloat16),
        "b2": jax.random.normal(k4, (FEATURE_DIM,), jnp.float32) * 0.01,
    }


def inception_v3_features(params, x_nchw, *, tile_hw=1024, feature_blocks=None):
    """Mirrors InceptionV3.forward: x [N, C, H, W] -> features [N, 2048] f32."""
    x = jnp.asarray(x_nchw)
    N, C, H, W = x.shape
    HW = H * W

    # NCHW -> NHWC and cast to bf16 up front so im2col + pads materialize the
    # patch tensor exactly once in bf16 (single HBM write).
    x_nhwc = jnp.transpose(x, (0, 2, 3, 1)).astype(jnp.bfloat16)
    patches = _im2col_3x3_same(x_nhwc)               # [N, HW, 9*C] bf16
    k_pad = params["w1"].shape[0]

    # HW tile: <=tile_hw rows, multiple of 16 (bf16 sublane packing); pad HW up
    # to a multiple of it (padded rows get zero pooling weight in-kernel).
    tile_hw = min(tile_hw, _round_up(HW, 16))
    hw_pad = _round_up(HW, tile_hw)
    patches = jnp.pad(
        patches,
        ((0, 0), (0, hw_pad - HW), (0, k_pad - patches.shape[-1])),
    )

    if feature_blocks is None:
        feature_blocks = _default_feature_blocks()
    f_blk = FEATURE_DIM // feature_blocks

    # VMEM budget: the f32 h2 temporary (tile_hw x f_blk) is the driver; leave
    # room for intermediates + double-buffered weights. Always >= 32 MiB so
    # v5e's 16 MiB scoped default never bites; stays well under v7x's 64 MiB.
    h2_bytes = tile_hw * f_blk * 4
    vmem_limit = int(min(100 << 20, max(32 << 20, 4 * h2_bytes + (8 << 20))))

    return fused_conv_conv_gap(
        patches,
        params["w1"], params["b1"].reshape(1, -1),
        params["w2"], params["b2"].reshape(1, -1),
        hw_total=HW, tile_hw=tile_hw,
        feature_blocks=feature_blocks,
        vmem_limit_bytes=vmem_limit,
    )


def _reference_features(params, x_nchw):
    """Plain-JAX reference of the same synthetic network (for validation)."""
    x = jnp.transpose(jnp.asarray(x_nchw), (0, 2, 3, 1)).astype(jnp.bfloat16)
    patches = _im2col_3x3_same(x)
    k_pad = params["w1"].shape[0]
    patches = jnp.pad(patches, ((0, 0), (0, 0), (0, k_pad - patches.shape[-1])))
    h1 = jnp.einsum("nsk,kc->nsc", patches, params["w1"],
                    preferred_element_type=jnp.float32) + params["b1"]
    h1 = jnp.maximum(h1, 0.0)
    h2 = jnp.einsum("nsc,cf->nsf", h1.astype(jnp.bfloat16), params["w2"],
                    preferred_element_type=jnp.float32) + params["b2"]
    h2 = jnp.maximum(h2, 0.0)
    return jnp.mean(h2, axis=1)


def _check(feats, ref, tag):
    assert feats.shape == ref.shape, (tag, feats.shape, ref.shape)
    assert feats.dtype == jnp.float32, (tag, feats.dtype)
    err = float(jnp.max(jnp.abs(feats - ref)))
    assert jnp.allclose(feats, ref, rtol=2e-2, atol=2e-2), (tag, "max abs err", err)


if __name__ == "__main__":
    key = jax.random.PRNGKey(0)
    pkey, xkey1, xkey2 = jax.random.split(key, 3)

    params = init_params(pkey, in_channels=3)

    # Case 1: batch=2, RGB, 16x16 — tile_hw=128 exercises multi-step HW
    # accumulation (no spatial padding).
    x1 = jax.random.uniform(xkey1, (2, 3, 16, 16), jnp.float32)
    fwd1 = jax.jit(functools.partial(inception_v3_features, tile_hw=128))
    feats1 = jax.block_until_ready(fwd1(params, x1))
    assert feats1.shape == (2, FEATURE_DIM), feats1.shape
    _check(feats1, _reference_features(params, x1), "case1")

    # Case 2: 15x15 (HW=225) — exercises the padded-row masking of the last
    # HW tile via the zeroed ones-vector path.
    x2 = jax.random.uniform(xkey2, (2, 3, 15, 15), jnp.float32)
    fwd2 = jax.jit(functools.partial(inception_v3_features, tile_hw=128))
    feats2 = jax.block_until_ready(fwd2(params, x2))
    _check(feats2, _reference_features(params, x2), "case2")

    # Case 3: force the feature-dim parallel split (v7x megacore path) so it
    # is validated regardless of which TPU generation we run on.
    fwd3 = jax.jit(functools.partial(inception_v3_features, tile_hw=128,
                                     feature_blocks=2))
    feats3 = jax.block_until_ready(fwd3(params, x1))
    _check(feats3, _reference_features(params, x1), "case3")

    print("KERNEL_OK")
</pallas_src>

<mosaic_0001>
module attributes {stable_mosaic.version = 11 : i64} {
  func.func @_fused_features_kernel(%arg0: i32, %arg1: i32, %arg2: i32, %arg3: memref<1x128x32xbf16, #tpu.memory_space<vmem>>, %arg4: memref<32x128xbf16, #tpu.memory_space<vmem>>, %arg5: memref<1x128xf32, #tpu.memory_space<vmem>>, %arg6: memref<128x2048xbf16, #tpu.memory_space<vmem>>, %arg7: memref<1x2048xf32, #tpu.memory_space<vmem>>, %arg8: memref<1x1x2048xf32, #tpu.memory_space<vmem>>, %arg9: memref<1x2048xf32, #tpu.memory_space<vmem>>) attributes {dimension_semantics = [#tpu.dimension_semantics<parallel>, #tpu.dimension_semantics<parallel>, #tpu.dimension_semantics<arbitrary>], iteration_bounds = array<i64: 2, 1, 2>, scalar_prefetch = 0 : i64, scratch_operands = 1 : i64, tpu.core_type = #tpu.core_type<tc>, window_params = [{transform_indices = @transform_0, window_bounds = array<i64: 1, 128, 32>}, {pipeline_mode = #tpu.pipeline_mode<synchronous>, transform_indices = @transform_1, window_bounds = array<i64: 32, 128>}, {pipeline_mode = #tpu.pipeline_mode<synchronous>, transform_indices = @transform_2, window_bounds = array<i64: 1, 128>}, {transform_indices = @transform_3, window_bounds = array<i64: 128, 2048>}, {transform_indices = @transform_4, window_bounds = array<i64: 1, 2048>}, {transform_indices = @transform_5, window_bounds = array<i64: 1, 1, 2048>}]} {
    %c0_i32 = arith.constant 0 : i32
    %0 = arith.cmpi eq, %arg2, %c0_i32 : i32
    %1 = arith.extui %0 : i1 to i32
    %c0_i32_0 = arith.constant 0 : i32
    %2 = arith.cmpi ne, %1, %c0_i32_0 : i32
    scf.if %2 {
      %cst_21 = arith.constant 0.000000e+00 : f32
      %29 = vector.broadcast %cst_21 : f32 to vector<1x2048xf32>
      %c0_22 = arith.constant 0 : index
      %c0_23 = arith.constant 0 : index
      %30 = vector.load %arg9[%c0_22, %c0_23] : memref<1x2048xf32, #tpu.memory_space<vmem>>, vector<1x2048xf32>
      tpu.vector_store %arg9[%c0_22, %c0_23], %29 {strides = array<i32>} : memref<1x2048xf32, #tpu.memory_space<vmem>>, vector<1x2048xf32>,
    } else {
    }
    %c0 = arith.constant 0 : index
    %c0_1 = arith.constant 0 : index
    %c0_2 = arith.constant 0 : index
    %3 = vector.load %arg3[%c0, %c0_1, %c0_2] : memref<1x128x32xbf16, #tpu.memory_space<vmem>>, vector<1x128x32xbf16>
    %4 = vector.shape_cast %3 : vector<1x128x32xbf16> to vector<128x32xbf16>
    %c0_3 = arith.constant 0 : index
    %c0_4 = arith.constant 0 : index
    %5 = vector.load %arg4[%c0_3, %c0_4] : memref<32x128xbf16, #tpu.memory_space<vmem>>, vector<32x128xbf16>
    %cst = arith.constant dense<0.000000e+00> : vector<128x128xf32>
    %6 = tpu.matmul %4, %5, %cst {dimension_numbers = #tpu.dot_dimension_numbers<[1], [0], [0], [1], [0, 0, 1, 1], [], []>} : vector<128x32xbf16>, vector<32x128xbf16>, vector<128x128xf32> -> vector<128x128xf32>
    %c0_5 = arith.constant 0 : index
    %c0_6 = arith.constant 0 : index
    %7 = vector.load %arg5[%c0_5, %c0_6] : memref<1x128xf32, #tpu.memory_space<vmem>>, vector<1x128xf32>
    %8 = vector.broadcast %7 : vector<1x128xf32> to vector<128x128xf32>
    %9 = arith.addf %6, %8 : vector<128x128xf32>
    %cst_7 = arith.constant 0.000000e+00 : f32
    %10 = vector.broadcast %cst_7 : f32 to vector<128x128xf32>
    %11 = arith.maximumf %9, %10 : vector<128x128xf32>
    %12 = arith.truncf %11 : vector<128x128xf32> to vector<128x128xbf16>
    %c0_8 = arith.constant 0 : index
    %c0_9 = arith.constant 0 : index
    %13 = vector.load %arg6[%c0_8, %c0_9] : memref<128x2048xbf16, #tpu.memory_space<vmem>>, vector<128x2048xbf16>
    %cst_10 = arith.constant dense<0.000000e+00> : vector<128x2048xf32>
    %14 = tpu.matmul %12, %13, %cst_10 {dimension_numbers = #tpu.dot_dimension_numbers<[1], [0], [0], [1], [0, 0, 1, 1], [], []>} : vector<128x128xbf16>, vector<128x2048xbf16>, vector<128x2048xf32> -> vector<128x2048xf32>
    %c0_11 = arith.constant 0 : index
    %c0_12 = arith.constant 0 : index
    %15 = vector.load %arg7[%c0_11, %c0_12] : memref<1x2048xf32, #tpu.memory_space<vmem>>, vector<1x2048xf32>
    %16 = vector.broadcast %15 : vector<1x2048xf32> to vector<128x2048xf32>
    %17 = arith.addf %14, %16 : vector<128x2048xf32>
    %cst_13 = arith.constant 0.000000e+00 : f32
    %18 = vector.broadcast %cst_13 : f32 to vector<128x2048xf32>
    %19 = arith.maximumf %17, %18 : vector<128x2048xf32>
    %cst_14 = arith.constant 1.000000e+00 : bf16
    %20 = vector.broadcast %cst_14 : bf16 to vector<1x128xbf16>
    %c0_15 = arith.constant 0 : index
    %c0_16 = arith.constant 0 : index
    %21 = vector.load %arg9[%c0_15, %c0_16] : memref<1x2048xf32, #tpu.memory_space<vmem>>, vector<1x2048xf32>
    %22 = arith.truncf %19 : vector<128x2048xf32> to vector<128x2048xbf16>
    %cst_17 = arith.constant dense<0.000000e+00> : vector<1x2048xf32>
    %23 = tpu.matmul %20, %22, %cst_17 {dimension_numbers = #tpu.dot_dimension_numbers<[1], [0], [0], [1], [0, 0, 1, 1], [], []>} : vector<1x128xbf16>, vector<128x2048xbf16>, vector<1x2048xf32> -> vector<1x2048xf32>
    %24 = arith.addf %21, %23 : vector<1x2048xf32>
    %c0_18 = arith.constant 0 : index
    %c0_19 = arith.constant 0 : index
    %25 = vector.load %arg9[%c0_18, %c0_19] : memref<1x2048xf32, #tpu.memory_space<vmem>>, vector<1x2048xf32>
    tpu.vector_store %arg9[%c0_18, %c0_19], %24 {strides = array<i32>} : memref<1x2048xf32, #tpu.memory_space<vmem>>, vector<1x2048xf32>,
    %c1_i32 = arith.constant 1 : i32
    %26 = arith.cmpi eq, %arg2, %c1_i32 : i32
    %27 = arith.extui %26 : i1 to i32
    %c0_i32_20 = arith.constant 0 : i32
    %28 = arith.cmpi ne, %27, %c0_i32_20 : i32
    scf.if %28 {
      %c0_21 = arith.constant 0 : index
      %c0_22 = arith.constant 0 : index
      %29 = vector.load %arg9[%c0_21, %c0_22] : memref<1x2048xf32, #tpu.memory_space<vmem>>, vector<1x2048xf32>
      %cst_23 = arith.constant 3.906250e-03 : f32
      %30 = vector.broadcast %cst_23 : f32 to vector<1x2048xf32>
      %31 = arith.mulf %29, %30 : vector<1x2048xf32>
      %c0_24 = arith.constant 0 : index
      %c0_25 = arith.constant 0 : index
      %c0_26 = arith.constant 0 : index
      %32 = vector.load %arg8[%c0_24, %c0_25, %c0_26] : memref<1x1x2048xf32, #tpu.memory_space<vmem>>, vector<1x1x2048xf32>
      %33 = vector.shape_cast %32 : vector<1x1x2048xf32> to vector<1x2048xf32>
      %34 = vector.shape_cast %31 : vector<1x2048xf32> to vector<1x1x2048xf32>
      tpu.vector_store %arg8[%c0_24, %c0_25, %c0_26], %34 {strides = array<i32>} : memref<1x1x2048xf32, #tpu.memory_space<vmem>>, vector<1x1x2048xf32>,
    } else {
    }
    return
  }
  func.func @transform_0(%arg0: i32, %arg1: i32, %arg2: i32) -> (i32, i32, i32) {
    %c0_i32 = arith.constant 0 : i32
    %c0_i32_0 = arith.constant 0 : i32
    return %arg0, %arg2, %c0_i32 : i32, i32, i32
  }
  func.func @transform_1(%arg0: i32, %arg1: i32, %arg2: i32) -> (i32, i32) {
    %c0_i32 = arith.constant 0 : i32
    %c0_i32_0 = arith.constant 0 : i32
    %c0_i32_1 = arith.constant 0 : i32
    return %c0_i32, %c0_i32_0 : i32, i32
  }
  func.func @transform_2(%arg0: i32, %arg1: i32, %arg2: i32) -> (i32, i32) {
    %c0_i32 = arith.constant 0 : i32
    %c0_i32_0 = arith.constant 0 : i32
    %c0_i32_1 = arith.constant 0 : i32
    return %c0_i32, %c0_i32_0 : i32, i32
  }
  func.func @transform_3(%arg0: i32, %arg1: i32, %arg2: i32) -> (i32, i32) {
    %c0_i32 = arith.constant 0 : i32
    %c0_i32_0 = arith.constant 0 : i32
    return %c0_i32, %arg1 : i32, i32
  }
  func.func @transform_4(%arg0: i32, %arg1: i32, %arg2: i32) -> (i32, i32) {
    %c0_i32 = arith.constant 0 : i32
    %c0_i32_0 = arith.constant 0 : i32
    return %c0_i32, %arg1 : i32, i32
  }
  func.func @transform_5(%arg0: i32, %arg1: i32, %arg2: i32) -> (i32, i32, i32) {
    %c0_i32 = arith.constant 0 : i32
    %c0_i32_0 = arith.constant 0 : i32
    return %arg0, %c0_i32, %arg1 : i32, i32, i32
  }
}

</mosaic_0001>

<bundles_post_ra>
// kernel: inception_v3_features.1
= control target key start
LH: loop header
LB: loop body
LE: loop exit
PB: predicated region body
PF: predicated region fallthrough
CT: control target
= control target key end

     0   :  { %s3683_s18 = smov 0   ;;  %s3685_s19 = smov 0   ;;  %s5455_s0 = inlined_call_operand.vmem [shape: bf16[2,256,32], index: 0, kind: input, shape index: {}]   ;;  %s5456_s1 = inlined_call_operand.vmem [shape: bf16[32,128], index: 1, kind: input, shape index: {}]   ;;  %s5457_s2 = inlined_call_operand.vmem [shape: f32[1,128], index: 2, kind: input, shape index: {}]   ;;  %s5458_s3 = inlined_call_operand.vmem [shape: bf16[128,2048], index: 3, kind: input, shape index: {}]   ;;  %s5459_s4 = inlined_call_operand.vmem [shape: f32[1,2048], index: 4, kind: input, shape index: {}]   ;;  %s5460_s5 = inlined_call_operand.vmem [shape: f32[2,1,2048], index: 5, kind: output, shape index: {}]  }
   0x1   :  { %s3687_s20 = smov 0   ;;  %s3689_s21 = smov 0  }
   0x2   :  { %s3691_s22 = smov 0  }
   0x3 LB: > { %s27_s23 = sadd.s32 1, %s3641_s20  ;;  %s34_s24 = sadd.s32 1, %s3645_s21  ;;  %s3649_s22 = sphi %s3691_s22, %s15_s22   ;;  %s3645_s21 = sphi %s3689_s21, %s5509_s21   ;;  %s3641_s20 = sphi %s3687_s20, %s5508_s20   ;;  %s3637_s19 = sphi %s3685_s19, %s5507_s19   ;;  %s3633_s18 = sphi %s3683_s18, %s5506_s18  }
   0x4   : > { %p28_p0 = scmp.ge.s32.totalorder %s27_s23, 2  ;;  %p2861_p1 = scmp.ge.s32.totalorder %s3649_s22, 1 }
   0x5   : > { %p236_p2 = scmp.lt.s32.totalorder %s3649_s22, 5 }
   0x6   : > { %s5511_s23 = smov (%p28_p0, %s27_s23), 0  ;;  %s5513_s24 = smov (!%p28_p0, %s34_s24), %s3645_s21 }
   0x7   : > { %p237_p3 = pnand %p2861_p1, %p236_p2  ;;  %p36_p4 = scmp.ge.s32.totalorder %s5513_s24, 2 }
   0x9   : > { %s5515_s24 = smov (%p36_p4, %s5513_s24), 0  ;;  %240 = sbr.rel (%p237_p3) target bundleno = 1000 (0x3e8), region = 40 }
   0xe   : > { %s2862_s25 = sshll.u32 %s3633_s18, 4  ;;  %p281_p5 = scmp.lt.s32.totalorder %s3637_s19, 1 }
   0xf   : > { %p283_p6 = scmp.lt.s32.totalorder %s2862_s25, 31  ;;  %p2866_p7 = scmp.ne.s32.totalorder %s3633_s18, 0 }
  0x10   : > { %s5517_s19 = smov (!%p281_p5, %s3637_s19), 1 }
  0x11   : > { %s5519_s25 = smov (!%p283_p6, %s2862_s25), 31  ;;  %s2863_s26 = sshll.u32 %s5517_s19, 5 }
  0x12   : > { %s2865_s27 = sshll.u32 %s5517_s19, 4  ;;  %s286_s28 = sadd.s32 %s2863_s26, %s5519_s25 }
  0x13   : > { %s3719_s6 = scalar_lea.vmem %s5460_s5, %s2865_s27  ;;  %s2864_s7 = sshll.u32 %s286_s28, 2 }
  0x14   : > { %s3724_s10 = scalar_lea.vmem %s5455_s0, %s2864_s7  ;;  %315 = sbr.rel (%p2866_p7) target bundleno = 28 (0x1c), region = 44 }
  0x19   : > { %v3651_v0 = vmov 0.0  }
  0x1a   : > { %316 = vst [vmem:[#allocation2] sm:$0xff] %v3651_v0 }
  0x1b   : > { %317 = vst [vmem:[#allocation2 + $0x8] sm:$0xff] %v3651_v0 }
  0x1c PF: > { %v3439_v1 = vld [vmem:[%s5456_s1 + $0x8] sm:$0xff]  ;;  %v3438_v2 = vld [vmem:[%s5456_s1] sm:$0xff]  ;;  %vm394_vm0 = vcmask 261120   ;;  %v3432_v5 = vld [vmem:[%s3724_s10 + $0x10] sm:$0xff]  ;;  %vm2704_vm1 = vcmask 1040384   ;;  %vm2706_vm2 = vcmask 1042434  }
  0x1d   : > { %425 = vmatpush.bf16.msra.mxu0 %v3439_v1  ;;  %v3430_v3 = vld [vmem:[%s3724_s10] sm:$0xff]  ;;  %v3431_v4 = vld [vmem:[%s3724_s10 + $0x8] sm:$0xff]  ;;  %v3433_v6 = vld [vmem:[%s3724_s10 + $0x18] sm:$0xff]  ;;  %vm2710_vm3 = vcmask 1044484   ;;  %vm2708_vm4 = vcmask 1041408   ;;  %vm2712_vm5 = vcmask 1046534  }
  0x1e   : > { %v3434_v7 = vld [vmem:[%s3724_s10 + $0x20] sm:$0xff]  ;;  %v3553_v8 = vld [vmem:[%s5458_s3 + $0x38c] sm:$0xf]  ;;  %v3373_v17 = vld [vmem:[%s5458_s3 + $0x388] sm:$0xf]  ;;  %vm2714_vm6 = vcmask 1045508  }
  0x1f   : > { %v3375_v9 = vld [vmem:[%s5458_s3 + $0x3c8] sm:$0xf0]  ;;  %v3365_v10 = vld [vmem:[%s5458_s3 + $0x380] sm:$0xf]  ;;  %v3552_v13 = vld [vmem:[%s5458_s3 + $0x384] sm:$0xf] }
  0x20   : > { %v3378_v11 = vor.u32 %v3553_v8, %v3375_v9  ;;  %v3560_v12 = vld [vmem:[%s5458_s3 + $0x3bc] sm:$0xf0]  ;;  %v3367_v14 = vld [vmem:[%s5458_s3 + $0x3c0] sm:$0xf0]  ;;  %v3561_v18 = vld [vmem:[%s5458_s3 + $0x3c4] sm:$0xf0] }
  0x21   : > { %426 = vmatpush.bf16.msra.mxu0 %v3438_v2  ;;  %v3366_v15 = vor.u32 %v3560_v12, %v3365_v10  ;;  %v3370_v16 = vor.u32 %v3552_v13, %v3367_v14  ;;  %v3374_v19 = vor.u32 %v3561_v18, %v3373_v17  ;;  %v3435_v20 = vld [vmem:[%s3724_s10 + $0x28] sm:$0xff]  ;;  %v3301_v21 = vld [vmem:[%s5458_s3 + $0x300] sm:$0xf]  ;;  %v3536_v23 = vld [vmem:[%s5458_s3 + $0x304] sm:$0xf]  ;;  %vm2716_vm7 = vcmask 1043456  }
  0x22   : > { %v3544_v22 = vld [vmem:[%s5458_s3 + $0x33c] sm:$0xf0]  ;;  %v3303_v25 = vld [vmem:[%s5458_s3 + $0x340] sm:$0xf0]  ;;  %v3309_v26 = vld [vmem:[%s5458_s3 + $0x308] sm:$0xf] }
  0x23   : > { %1296 = vmatpush.bf16.msra.mxu1 %v3366_v15  ;;  %1345 = vmatpush.bf16.msra.mxu2 %v3370_v16  ;;  %v3302_v24 = vor.u32 %v3544_v22, %v3301_v21  ;;  %v3545_v27 = vld [vmem:[%s5458_s3 + $0x344] sm:$0xf0]  ;;  %v3306_v28 = vor.u32 %v3536_v23, %v3303_v25  ;;  %v3537_v30 = vld [vmem:[%s5458_s3 + $0x30c] sm:$0xf]  ;;  %v3237_v32 = vld [vmem:[%s5458_s3 + $0x280] sm:$0xf] }
  0x24   : > { %2907 = vmatmul.msk.bf16.vlgmr.msra.gmra.mxu0 %vm394_vm0, %v3430_v3  ;;  %1394 = vmatpush.bf16.msra.mxu3 %v3374_v19  ;;  %v3310_v29 = vor.u32 %v3545_v27, %v3309_v26  ;;  %v3311_v31 = vld [vmem:[%s5458_s3 + $0x348] sm:$0xf0]  ;;  %v3528_v34 = vld [vmem:[%s5458_s3 + $0x2bc] sm:$0xf0]  ;;  %v3520_v35 = vld [vmem:[%s5458_s3 + $0x284] sm:$0xf] }
  0x25   : > { %1443 = vmatpush.bf16.msrb.mxu0 %v3378_v11  ;;  %v3314_v33 = vor.u32 %v3537_v30, %v3311_v31  ;;  %v3239_v36 = vld [vmem:[%s5458_s3 + $0x2c0] sm:$0xf0]  ;;  %v3238_v37 = vor.u32 %v3528_v34, %v3237_v32  ;;  %v3245_v39 = vld [vmem:[%s5458_s3 + $0x288] sm:$0xf]  ;;  %v3521_v41 = vld [vmem:[%s5458_s3 + $0x28c] sm:$0xf] }
  0x26   : > { %v3242_v38 = vor.u32 %v3520_v35, %v3239_v36  ;;  %v3529_v40 = vld [vmem:[%s5458_s3 + $0x2c4] sm:$0xf0]  ;;  %v3247_v43 = vld [vmem:[%s5458_s3 + $0x2c8] sm:$0xf0]  ;;  %v3173_v44 = vld [vmem:[%s5458_s3 + $0x200] sm:$0xf] }
  0x27   : > { %1297 = vmatpush.bf16.msra.mxu1 %v3302_v24  ;;  %1346 = vmatpush.bf16.msra.mxu2 %v3306_v28  ;;  %v3246_v42 = vor.u32 %v3529_v40, %v3245_v39  ;;  %v3512_v45 = vld [vmem:[%s5458_s3 + $0x23c] sm:$0xf0]  ;;  %v3250_v46 = vor.u32 %v3521_v41, %v3247_v43  ;;  %v3504_v47 = vld [vmem:[%s5458_s3 + $0x204] sm:$0xf]  ;;  %v3181_v49 = vld [vmem:[%s5458_s3 + $0x208] sm:$0xf] }
  0x28   : > { %1395 = vmatpush.bf16.msra.mxu3 %v3310_v29  ;;  %v3175_v48 = vld [vmem:[%s5458_s3 + $0x240] sm:$0xf0]  ;;  %v3174_v50 = vor.u32 %v3512_v45, %v3173_v44  ;;  %v3513_v51 = vld [vmem:[%s5458_s3 + $0x244] sm:$0xf0]  ;;  %v3505_v52 = vld [vmem:[%s5458_s3 + $0x20c] sm:$0xf] }
  0x29   : > { %1444 = vmatpush.bf16.msrb.mxu0 %v3314_v33  ;;  %v3183_v53 = vld [vmem:[%s5458_s3 + $0x248] sm:$0xf0]  ;;  %v3178_v54 = vor.u32 %v3504_v47, %v3175_v48  ;;  %v3182_v55 = vor.u32 %v3513_v51, %v3181_v49  ;;  %v3109_v57 = vld [vmem:[%s5458_s3 + $0x180] sm:$0xf]  ;;  %v3488_v59 = vld [vmem:[%s5458_s3 + $0x184] sm:$0xf] }
  0x2a   : > { %v3186_v56 = vor.u32 %v3505_v52, %v3183_v53  ;;  %v3496_v58 = vld [vmem:[%s5458_s3 + $0x1bc] sm:$0xf0]  ;;  %v3111_v61 = vld [vmem:[%s5458_s3 + $0x1c0] sm:$0xf0]  ;;  %v3117_v62 = vld [vmem:[%s5458_s3 + $0x188] sm:$0xf] }
  0x2b   : > { %1298 = vmatpush.bf16.msra.mxu1 %v3238_v37  ;;  %1347 = vmatpush.bf16.msra.mxu2 %v3242_v38  ;;  %v3110_v60 = vor.u32 %v3496_v58, %v3109_v57  ;;  %v3497_v63 = vld [vmem:[%s5458_s3 + $0x1c4] sm:$0xf0]  ;;  %v3436_v0 = vld [vmem:[%s3724_s10 + $0x30] sm:$0xff]  ;;  %v3114_v1 = vor.u32 %v3488_v59, %v3111_v61  ;;  %v3489_v3 = vld [vmem:[%s5458_s3 + $0x18c] sm:$0xf]  ;;  %p3427_p8 = scmp.ne.s32.totalorder %s3633_s18, 1 }
  0x2c   : > { %1396 = vmatpush.bf16.msra.mxu3 %v3246_v42  ;;  %v3118_v2 = vor.u32 %v3497_v63, %v3117_v62  ;;  %v3472_v8 = vld [vmem:[%s5458_s3 + $0x104] sm:$0xf]  ;;  %v3053_v11 = vld [vmem:[%s5458_s3 + $0x108] sm:$0xf]  ;;  %v3473_v15 = vld [vmem:[%s5458_s3 + $0x10c] sm:$0xf] }
  0x2d   : > { %1445 = vmatpush.bf16.msrb.mxu0 %v3250_v46  ;;  %v3047_v10 = vld [vmem:[%s5458_s3 + $0x140] sm:$0xf0]  ;;  %v3481_v12 = vld [vmem:[%s5458_s3 + $0x144] sm:$0xf0]  ;;  %v3055_v16 = vld [vmem:[%s5458_s3 + $0x148] sm:$0xf0] }
  0x2e   : > { %v3050_v13 = vor.u32 %v3472_v8, %v3047_v10  ;;  %v3054_v14 = vor.u32 %v3481_v12, %v3053_v11  ;;  %v3058_v17 = vor.u32 %v3473_v15, %v3055_v16  ;;  %v2981_v18 = vld [vmem:[%s5458_s3 + $0x80] sm:$0xf]  ;;  %v2983_v22 = vld [vmem:[%s5458_s3 + $0xc0] sm:$0xf0]  ;;  %v2989_v23 = vld [vmem:[%s5458_s3 + $0x88] sm:$0xf] }
  0x2f   : > { %1299 = vmatpush.bf16.msra.mxu1 %v3174_v50  ;;  %1348 = vmatpush.bf16.msra.mxu2 %v3178_v54  ;;  %v3464_v19 = vld [vmem:[%s5458_s3 + $0xbc] sm:$0xf0]  ;;  %v3465_v24 = vld [vmem:[%s5458_s3 + $0xc4] sm:$0xf0]  ;;  %v3457_v27 = vld [vmem:[%s5458_s3 + $0x8c] sm:$0xf] }
  0x30   : > { %1397 = vmatpush.bf16.msra.mxu3 %v3182_v55  ;;  %v2982_v21 = vor.u32 %v3464_v19, %v2981_v18  ;;  %v2990_v26 = vor.u32 %v3465_v24, %v2989_v23  ;;  %v2991_v28 = vld [vmem:[%s5458_s3 + $0xc8] sm:$0xf0]  ;;  %v2917_v30 = vld [vmem:[%s5458_s3] sm:$0xf]  ;;  %v3440_v32 = vld [vmem:[%s5458_s3 + $0x4] sm:$0xf] }
  0x31   : > { %1446 = vmatpush.bf16.msrb.mxu0 %v3186_v56  ;;  %v2994_v29 = vor.u32 %v3457_v27, %v2991_v28  ;;  %v3448_v31 = vld [vmem:[%s5458_s3 + $0x3c] sm:$0xf0]  ;;  %v2919_v34 = vld [vmem:[%s5458_s3 + $0x40] sm:$0xf0]  ;;  %v2925_v35 = vld [vmem:[%s5458_s3 + $0x8] sm:$0xf] }
  0x32   : > { %v2918_v33 = vor.u32 %v3448_v31, %v2917_v30  ;;  %v3449_v36 = vld [vmem:[%s5458_s3 + $0x44] sm:$0xf0]  ;;  %v2922_v37 = vor.u32 %v3440_v32, %v2919_v34  ;;  %v3441_v39 = vld [vmem:[%s5458_s3 + $0xc] sm:$0xf]  ;;  %v3437_v42 = vld [vmem:[%s3724_s10 + $0x38] sm:$0xff] }
  0x33   : > { %1300 = vmatpush.bf16.msra.mxu1 %v3110_v60  ;;  %1349 = vmatpush.bf16.msra.mxu2 %v3114_v1  ;;  %v2926_v38 = vor.u32 %v3449_v36, %v2925_v35  ;;  %v2927_v40 = vld [vmem:[%s5458_s3 + $0x48] sm:$0xf0]  ;;  %v3944_v44 = vld [vmem:[%s5457_s2] ss:$0 sm:$0xff]  ;;  %v3563_v10 = vld [vmem:[%s5458_s3 + $0x3d4] sm:$0xf0] }
  0x34   : > { %2908 = vmatmul.msk.bf16.gmra.mxu0 %vm394_vm0, %v3431_v4  ;;  %v3119_v4 = vld [vmem:[%s5458_s3 + $0x1c8] sm:$0xf0]  ;;  %1398 = vmatpush.bf16.msra.mxu3 %v3118_v2  ;;  %v2930_v41 = vor.u32 %v3441_v39, %v2927_v40  ;;  %v3554_v18 = vld [vmem:[%s5458_s3 + $0x394] sm:$0xf]  ;;  %v3381_v23 = vld [vmem:[%s5458_s3 + $0x390] sm:$0xf] }
  0x35   : > { %v3383_v19 = vld [vmem:[%s5458_s3 + $0x3d0] sm:$0xf0]  ;;  %v3562_v24 = vld [vmem:[%s5458_s3 + $0x3cc] sm:$0xf0]  ;;  %v3547_v35 = vld [vmem:[%s5458_s3 + $0x354] sm:$0xf0] }
  0x36   : > { %v3317_v28 = vld [vmem:[%s5458_s3 + $0x310] sm:$0xf]  ;;  %v3538_v30 = vld [vmem:[%s5458_s3 + $0x314] sm:$0xf]  ;;  %v3539_v36 = vld [vmem:[%s5458_s3 + $0x31c] sm:$0xf] }
  0x37   : > { %1350 = vmatpush.bf16.msra.mxu2 %v3050_v13  ;;  %v3319_v32 = vld [vmem:[%s5458_s3 + $0x350] sm:$0xf0]  ;;  %v3253_v40 = vld [vmem:[%s5458_s3 + $0x290] sm:$0xf] }
  0x38   : > { %1399 = vmatpush.bf16.msra.mxu3 %v3054_v14  ;;  %v3322_v34 = vor.u32 %v3538_v30, %v3319_v32  ;;  %v3483_v32 = vld [vmem:[%s5458_s3 + $0x154] sm:$0xf0] }
  0x3c   : > { %1400 = vmatpush.bf16.msra.mxu3 %v2990_v26  ;;  %v3382_v26 = vor.u32 %v3562_v24, %v3381_v23  ;;  %v3061_v23 = vld [vmem:[%s5458_s3 + $0x110] sm:$0xf] }
  0x40   : > { %1401 = vmatpush.bf16.msra.mxu3 %v2926_v38 }
  0x44   : > { %2909 = vmatmul.msk.bf16.gmra.mxu0 %vm394_vm0, %v3432_v5  ;;  %v3122_v5 = vor.u32 %v3489_v3, %v3119_v4 }
  0x46   : > { %1447 = vmatpush.bf16.msrb.mxu0 %v3122_v5 }
  0x4a   : > { %1448 = vmatpush.bf16.msrb.mxu0 %v3058_v17 }
  0x4e   : > { %1449 = vmatpush.bf16.msrb.mxu0 %v2994_v29  ;;  %v3546_v29 = vld [vmem:[%s5458_s3 + $0x34c] sm:$0xf0] }
  0x4f   : > { %v3318_v31 = vor.u32 %v3546_v29, %v3317_v28  ;;  %v3063_v28 = vld [vmem:[%s5458_s3 + $0x150] sm:$0xf0] }
  0x52   : > { %1450 = vmatpush.bf16.msrb.mxu0 %v2930_v41  ;;  %v3530_v41 = vld [vmem:[%s5458_s3 + $0x2cc] sm:$0xf0] }
  0x54   : > { %2910 = vmatmul.msk.bf16.gmra.mxu0 %vm394_vm0, %v3433_v6  ;;  %v3045_v6 = vld [vmem:[%s5458_s3 + $0x100] sm:$0xf] }
  0x64   : > { %2911 = vmatmul.msk.bf16.gmra.mxu0 %vm394_vm0, %v3434_v7  ;;  %v3480_v7 = vld [vmem:[%s5458_s3 + $0x13c] sm:$0xf0] }
  0x65   : > { %v3046_v9 = vor.u32 %v3480_v7, %v3045_v6 }
  0x67   : > { %1301 = vmatpush.bf16.msra.mxu1 %v3046_v9  ;;  %v3389_v9 = vld [vmem:[%s5458_s3 + $0x398] sm:$0xf] }
  0x68   : > { %v3390_v11 = vor.u32 %v3563_v10, %v3389_v9 }
  0x6a   : > { %1590 = vmatpush.bf16.msrb.mxu3 %v3390_v11  ;;  %v3125_v11 = vld [vmem:[%s5458_s3 + $0x190] sm:$0xf] }
  0x6b   : > { %1302 = vmatpush.bf16.msra.mxu1 %v2982_v21  ;;  %v3386_v21 = vor.u32 %v3554_v18, %v3383_v19  ;;  %v3499_v18 = vld [vmem:[%s5458_s3 + $0x1d4] sm:$0xf0] }
  0x6f   : > { %1303 = vmatpush.bf16.msra.mxu1 %v2918_v33  ;;  %v3325_v33 = vld [vmem:[%s5458_s3 + $0x318] sm:$0xf] }
  0x70   : > { %v3326_v38 = vor.u32 %v3547_v35, %v3325_v33  ;;  %v3475_v33 = vld [vmem:[%s5458_s3 + $0x11c] sm:$0xf]  ;;  %v2997_v35 = vld [vmem:[%s5458_s3 + $0x90] sm:$0xf] }
  0x72   : > { %1591 = vmatpush.bf16.msrb.mxu3 %v3326_v38  ;;  %v2999_v38 = vld [vmem:[%s5458_s3 + $0xd0] sm:$0xf0] }
  0x73   : > { %1492 = vmatpush.bf16.msrb.mxu1 %v3382_v26  ;;  %v3482_v26 = vld [vmem:[%s5458_s3 + $0x14c] sm:$0xf0] }
  0x74   : > { %2912 = vmatmul.msk.bf16.gmra.mxu0 %vm394_vm0, %v3435_v20  ;;  %v3456_v20 = vld [vmem:[%s5458_s3 + $0x84] sm:$0xf]  ;;  %v3062_v29 = vor.u32 %v3482_v26, %v3061_v23 }
  0x75   : > { %v2986_v25 = vor.u32 %v3456_v20, %v2983_v22  ;;  %v3555_v20 = vld [vmem:[%s5458_s3 + $0x39c] sm:$0xf] }
  0x76   : > { %v3391_v22 = vld [vmem:[%s5458_s3 + $0x3d8] sm:$0xf0] }
  0x77   : > { %1351 = vmatpush.bf16.msra.mxu2 %v2986_v25  ;;  %v3394_v25 = vor.u32 %v3555_v20, %v3391_v22  ;;  %1493 = vmatpush.bf16.msrb.mxu1 %v3318_v31  ;;  %v3135_v22 = vld [vmem:[%s5458_s3 + $0x1d8] sm:$0xf0]  ;;  %v3069_v31 = vld [vmem:[%s5458_s3 + $0x118] sm:$0xf] }
  0x79   : > { %1639 = vmatpush.bf16.msra.mxu0 %v3394_v25 }
  0x7b   : > { %1352 = vmatpush.bf16.msra.mxu2 %v2922_v37  ;;  %v3327_v37 = vld [vmem:[%s5458_s3 + $0x358] sm:$0xf0] }
  0x7c   : > { %v3330_v39 = vor.u32 %v3539_v36, %v3327_v37  ;;  %v3466_v36 = vld [vmem:[%s5458_s3 + $0xcc] sm:$0xf0]  ;;  %v3458_v37 = vld [vmem:[%s5458_s3 + $0x94] sm:$0xf] }
  0x7e   : > { %1640 = vmatpush.bf16.msra.mxu0 %v3330_v39  ;;  %v3070_v39 = vor.u32 %v3483_v32, %v3069_v31 }
  0x7f   : > { %1541 = vmatpush.bf16.msrb.mxu2 %v3386_v21  ;;  %v3491_v21 = vld [vmem:[%s5458_s3 + $0x19c] sm:$0xf] }
  0x80   : > { %v3138_v25 = vor.u32 %v3491_v21, %v3135_v22 }
  0x83   : > { %1542 = vmatpush.bf16.msrb.mxu2 %v3322_v34  ;;  %v3071_v34 = vld [vmem:[%s5458_s3 + $0x158] sm:$0xf0] }
  0x84   : > { %2913 = vmatmul.msk.bf16.gmra.mxu0 %vm394_vm0, %v3436_v0 }
  0x94   : > { %2914 = vmatmul.msk.bf16.gmra.mxu0 %vm394_vm0, %v3437_v42  ;;  %v3522_v42 = vld [vmem:[%s5458_s3 + $0x294] sm:$0xf] }
  0xa1   : > { %v428_v43 = vpop.f32.mrf.mxu0 }
  0xa2   : > { %v429_v45 = vadd.f32 %v3944_v44, %v428_v43 }
  0xa4   : > { %v468_v48 = vmax.f32 %v429_v45, 0.0  ;;  %v3254_v45 = vor.u32 %v3530_v41, %v3253_v40  ;;  %v3074_v40 = vor.u32 %v3475_v33, %v3071_v34  ;;  %v3005_v41 = vld [vmem:[%s5458_s3 + $0x98] sm:$0xf] }
  0xa6   : > { %1494 = vmatpush.bf16.msrb.mxu1 %v3254_v45  ;;  %v3467_v45 = vld [vmem:[%s5458_s3 + $0xd4] sm:$0xf0] }
  0xa9   : > { %v430_v46 = vpop.f32.mrf.mxu0 }
  0xaa   : > { %v431_v47 = vadd.f32 %v3944_v44, %v430_v46  ;;  %v3255_v46 = vld [vmem:[%s5458_s3 + $0x2d0] sm:$0xf0] }
  0xac   : > { %v469_v49 = vmax.f32 %v431_v47, 0.0  ;;  %v3261_v47 = vld [vmem:[%s5458_s3 + $0x298] sm:$0xf] }
  0xae   : > { %v3948_v50 = vpack.c.bf16 %v469_v49, %v468_v48  ;;  %v3531_v48 = vld [vmem:[%s5458_s3 + $0x2d4] sm:$0xf0] }
  0xb0   : > { %1304 = vmatmul.bf16.vlgmr.msra.gmra.mxu1 %v3948_v50  ;;  %1353 = vmatmul.bf16.vlgmr.msra.gmra.mxu2 %v3948_v50 }
  0xb1   : > { %1402 = vmatmul.bf16.vlgmr.msra.gmra.mxu3 %v3948_v50  ;;  %1451 = vmatmul.bf16.vlgmr.msrb.gmra.mxu0 %v3948_v50  ;;  %v433_v51 = vpop.f32.mrf.mxu0 }
  0xb2   : > { %v434_v52 = vadd.f32 %v3944_v44, %v433_v51  ;;  %v3258_v51 = vor.u32 %v3522_v42, %v3255_v46  ;;  %v2998_v42 = vor.u32 %v3466_v36, %v2997_v35  ;;  %v3459_v46 = vld [vmem:[%s5458_s3 + $0x9c] sm:$0xf] }
  0xb4   : > { %v470_v55 = vmax.f32 %v434_v52, 0.0  ;;  %v3262_v52 = vor.u32 %v3531_v48, %v3261_v47  ;;  %1543 = vmatpush.bf16.msrb.mxu2 %v3258_v51  ;;  %v3007_v47 = vld [vmem:[%s5458_s3 + $0xd8] sm:$0xf0] }
  0xb6   : > { %1592 = vmatpush.bf16.msrb.mxu3 %v3262_v52  ;;  %v3006_v52 = vor.u32 %v3467_v45, %v3005_v41 }
  0xb9   : > { %v435_v53 = vpop.f32.mrf.mxu0 }
  0xba   : > { %v436_v54 = vadd.f32 %v3944_v44, %v435_v53  ;;  %v3523_v53 = vld [vmem:[%s5458_s3 + $0x29c] sm:$0xf] }
  0xbc   : > { %v471_v56 = vmax.f32 %v436_v54, 0.0  ;;  %v3263_v54 = vld [vmem:[%s5458_s3 + $0x2d8] sm:$0xf0] }
  0xbe   : > { %v3956_v57 = vpack.c.bf16 %v471_v56, %v470_v55  ;;  %v3266_v56 = vor.u32 %v3523_v53, %v3263_v54  ;;  %v3010_v53 = vor.u32 %v3459_v46, %v3007_v47  ;;  %v2933_v54 = vld [vmem:[%s5458_s3 + $0x10] sm:$0xf] }
  0xc0   : > { %1309 = vmatmul.bf16.gmra.mxu1 %v3956_v57  ;;  %1358 = vmatmul.bf16.gmra.mxu2 %v3956_v57 }
  0xc1   : > { %1407 = vmatmul.bf16.gmra.mxu3 %v3956_v57  ;;  %1456 = vmatmul.bf16.gmra.mxu0 %v3956_v57  ;;  %v438_v58 = vpop.f32.mrf.mxu0 }
  0xc2   : > { %v439_v59 = vadd.f32 %v3944_v44, %v438_v58  ;;  %v3189_v58 = vld [vmem:[%s5458_s3 + $0x210] sm:$0xf]  ;;  %1641 = vmatpush.bf16.msra.mxu0 %v3266_v56  ;;  %v3442_v56 = vld [vmem:[%s5458_s3 + $0x14] sm:$0xf] }
  0xc4   : > { %v472_v62 = vmax.f32 %v439_v59, 0.0  ;;  %v3514_v59 = vld [vmem:[%s5458_s3 + $0x24c] sm:$0xf0] }
  0xc9   : > { %v440_v60 = vpop.f32.mrf.mxu0 }
  0xca   : > { %v441_v61 = vadd.f32 %v3944_v44, %v440_v60  ;;  %v3506_v60 = vld [vmem:[%s5458_s3 + $0x214] sm:$0xf] }
  0xcc   : > { %v473_v63 = vmax.f32 %v441_v61, 0.0 }
  0xce   : > { %v3964_v0 = vpack.c.bf16 %v473_v63, %v472_v62  ;;  %v3190_v63 = vor.u32 %v3514_v59, %v3189_v58 }
  0xd0   : > { %1314 = vmatmul.bf16.gmra.mxu1 %v3964_v0  ;;  %1363 = vmatmul.bf16.gmra.mxu2 %v3964_v0 }
  0xd1   : > { %1412 = vmatmul.bf16.gmra.mxu3 %v3964_v0  ;;  %1461 = vmatmul.bf16.gmra.mxu0 %v3964_v0  ;;  %v443_v1 = vpop.f32.mrf.mxu0 }
  0xd2   : > { %v444_v2 = vadd.f32 %v3944_v44, %v443_v1  ;;  %v3191_v1 = vld [vmem:[%s5458_s3 + $0x250] sm:$0xf0]  ;;  %1495 = vmatpush.bf16.msrb.mxu1 %v3190_v63 }
  0xd4   : > { %v474_v5 = vmax.f32 %v444_v2, 0.0  ;;  %v3197_v2 = vld [vmem:[%s5458_s3 + $0x218] sm:$0xf] }
  0xd9   : > { %v445_v3 = vpop.f32.mrf.mxu0 }
  0xda   : > { %v446_v4 = vadd.f32 %v3944_v44, %v445_v3  ;;  %v3194_v3 = vor.u32 %v3506_v60, %v3191_v1  ;;  %v3451_v1 = vld [vmem:[%s5458_s3 + $0x54] sm:$0xf0] }
  0xdc   : > { %v475_v6 = vmax.f32 %v446_v4, 0.0  ;;  %v3515_v4 = vld [vmem:[%s5458_s3 + $0x254] sm:$0xf0]  ;;  %1544 = vmatpush.bf16.msrb.mxu2 %v3194_v3 }
  0xdd   : > { %v3198_v9 = vor.u32 %v3515_v4, %v3197_v2  ;;  %v3443_v2 = vld [vmem:[%s5458_s3 + $0x1c] sm:$0xf] }
  0xde   : > { %v3972_v7 = vpack.c.bf16 %v475_v6, %v474_v5  ;;  %v3507_v5 = vld [vmem:[%s5458_s3 + $0x21c] sm:$0xf] }
  0xdf   : > { %v3199_v6 = vld [vmem:[%s5458_s3 + $0x258] sm:$0xf0]  ;;  %1593 = vmatpush.bf16.msrb.mxu3 %v3198_v9 }
  0xe0   : > { %1319 = vmatmul.bf16.gmra.mxu1 %v3972_v7  ;;  %1368 = vmatmul.bf16.gmra.mxu2 %v3972_v7  ;;  %v3202_v10 = vor.u32 %v3507_v5, %v3199_v6  ;;  %v2943_v5 = vld [vmem:[%s5458_s3 + $0x58] sm:$0xf0] }
  0xe1   : > { %1417 = vmatmul.bf16.gmra.mxu3 %v3972_v7  ;;  %1466 = vmatmul.bf16.gmra.mxu0 %v3972_v7  ;;  %v448_v8 = vpop.f32.mrf.mxu0  ;;  %v2946_v6 = vor.u32 %v3443_v2, %v2943_v5 }
  0xe2   : > { %v449_v12 = vadd.f32 %v3944_v44, %v448_v8  ;;  %1642 = vmatpush.bf16.msra.mxu0 %v3202_v10 }
  0xe4   : > { %v476_v15 = vmax.f32 %v449_v12, 0.0  ;;  %v3498_v12 = vld [vmem:[%s5458_s3 + $0x1cc] sm:$0xf0] }
  0xe6   : > { %1643 = vmatpush.bf16.msra.mxu0 %v3138_v25 }
  0xe9   : > { %v450_v13 = vpop.f32.mrf.mxu0 }
  0xea   : > { %v451_v14 = vadd.f32 %v3944_v44, %v450_v13  ;;  %v3490_v13 = vld [vmem:[%s5458_s3 + $0x194] sm:$0xf]  ;;  %1644 = vmatpush.bf16.msra.mxu0 %v3074_v40 }
  0xec   : > { %v477_v16 = vmax.f32 %v451_v14, 0.0  ;;  %v3126_v14 = vor.u32 %v3498_v12, %v3125_v11 }
  0xee   : > { %v3986_v17 = vpack.c.bf16 %v477_v16, %v476_v15  ;;  %v3127_v15 = vld [vmem:[%s5458_s3 + $0x1d0] sm:$0xf0]  ;;  %v3133_v16 = vld [vmem:[%s5458_s3 + $0x198] sm:$0xf]  ;;  %1496 = vmatpush.bf16.msrb.mxu1 %v3126_v14  ;;  %1645 = vmatpush.bf16.msra.mxu0 %v3010_v53 }
  0xef   : > { %v3130_v20 = vor.u32 %v3490_v13, %v3127_v15  ;;  %v3134_v24 = vor.u32 %v3499_v18, %v3133_v16  ;;  %v4205_v16 = vld [vmem:[%s5459_s4] sm:$0xff] }
  0xf0   : > { %1324 = vmatmul.bf16.gmra.mxu1 %v3986_v17  ;;  %1373 = vmatmul.bf16.gmra.mxu2 %v3986_v17  ;;  %v4220_v26 = vperm.slane %v4205_v16, 1 }
  0xf1   : > { %1422 = vmatmul.bf16.gmra.mxu3 %v3986_v17  ;;  %1471 = vmatmul.bf16.gmra.mxu0 %v3986_v17  ;;  %v453_v27 = vpop.f32.mrf.mxu0 }
  0xf2   : > { %v454_v43 = vadd.f32 %v3944_v44, %v453_v27  ;;  %v3474_v27 = vld [vmem:[%s5458_s3 + $0x114] sm:$0xf]  ;;  %1545 = vmatpush.bf16.msrb.mxu2 %v3130_v20  ;;  %1594 = vmatpush.bf16.msrb.mxu3 %v3134_v24  ;;  %v4213_v20 = vperm.slane %v4205_v16, 3 }
  0xf3   : > { %v3066_v30 = vor.u32 %v3474_v27, %v3063_v28  ;;  %1497 = vmatpush.bf16.msrb.mxu1 %v3062_v29  ;;  %1646 = vmatpush.bf16.msra.mxu0 %v2946_v6  ;;  %v4224_v29 = vperm.slane %v4205_v16, 2 }
  0xf4   : > { %v478_v61 = vmax.f32 %v454_v43, 0.0  ;;  %v3002_v43 = vor.u32 %v3458_v37, %v2999_v38 }
  0xf6   : > { %1546 = vmatpush.bf16.msrb.mxu2 %v3066_v30  ;;  %1595 = vmatpush.bf16.msrb.mxu3 %v3070_v39 }
  0xf7   : > { %1498 = vmatpush.bf16.msrb.mxu1 %v2998_v42 }
  0xf9   : > { %v455_v49 = vpop.f32.mrf.mxu0 }
  0xfa   : > { %v456_v55 = vadd.f32 %v3944_v44, %v455_v49  ;;  %1547 = vmatpush.bf16.msrb.mxu2 %v3002_v43  ;;  %1596 = vmatpush.bf16.msrb.mxu3 %v3006_v52 }
  0xfc   : > { %v479_v62 = vmax.f32 %v456_v55, 0.0  ;;  %v3450_v55 = vld [vmem:[%s5458_s3 + $0x4c] sm:$0xf0] }
  0xfd   : > { %v2934_v60 = vor.u32 %v3450_v55, %v2933_v54 }
  0xfe   : > { %v4084_v8 = vpack.c.bf16 %v479_v62, %v478_v61  ;;  %v2935_v61 = vld [vmem:[%s5458_s3 + $0x50] sm:$0xf0]  ;;  %v2941_v62 = vld [vmem:[%s5458_s3 + $0x18] sm:$0xf] }
  0xff   : > { %v2938_v63 = vor.u32 %v3442_v56, %v2935_v61  ;;  %v2942_v4 = vor.u32 %v3451_v1, %v2941_v62  ;;  %1499 = vmatpush.bf16.msrb.mxu1 %v2934_v60 }
 0x100   : > { %1329 = vmatmul.bf16.gmra.mxu1 %v4084_v8  ;;  %1378 = vmatmul.bf16.gmra.mxu2 %v4084_v8 }
 0x101   : > { %1427 = vmatmul.bf16.gmra.mxu3 %v4084_v8  ;;  %1476 = vmatmul.bf16.gmra.mxu0 %v4084_v8  ;;  %v458_v19 = vpop.f32.mrf.mxu0 }
 0x102   : > { %v459_v48 = vadd.f32 %v3944_v44, %v458_v19  ;;  %1548 = vmatpush.bf16.msrb.mxu2 %v2938_v63  ;;  %1597 = vmatpush.bf16.msrb.mxu3 %v2942_v4 }
 0x104   : > { %v480_v58 = vmax.f32 %v459_v48, 0.0 }
 0x109   : > { %v460_v49 = vpop.f32.mrf.mxu0 }
 0x10a   : > { %v461_v51 = vadd.f32 %v3944_v44, %v460_v49 }
 0x10c   : > { %v481_v59 = vmax.f32 %v461_v51, 0.0 }
 0x10e   : > { %v4185_v3 = vpack.c.bf16 %v481_v59, %v480_v58 }
 0x110   : > { %1334 = vmatmul.bf16.gmra.mxu1 %v4185_v3  ;;  %1383 = vmatmul.bf16.gmra.mxu2 %v4185_v3 }
 0x111   : > { %1432 = vmatmul.bf16.gmra.mxu3 %v4185_v3  ;;  %1481 = vmatmul.bf16.gmra.mxu0 %v4185_v3  ;;  %v463_v9 = vpop.f32.mrf.mxu0 }
 0x112   : > { %v464_v10 = vadd.f32 %v3944_v44, %v463_v9 }
 0x114   : > { %v482_v13 = vmax.f32 %v464_v10, 0.0 }
 0x119   : > { %v465_v11 = vpop.f32.mrf.mxu0 }
 0x11a   : > { %v466_v12 = vadd.f32 %v3944_v44, %v465_v11  ;;  %v4208_v44 = vperm.slane %v4205_v16, 0 }
 0x11c   : > { %v483_v14 = vmax.f32 %v466_v12, 0.0 }
 0x11e   : > { %v4196_v15 = vpack.c.bf16 %v483_v14, %v482_v13 }
 0x120   : > { %1339 = vmatmul.bf16.gmra.mxu1 %v4196_v15  ;;  %1388 = vmatmul.bf16.gmra.mxu2 %v4196_v15 }
 0x121   : > { %1437 = vmatmul.bf16.gmra.mxu3 %v4196_v15  ;;  %1486 = vmatmul.bf16.gmra.mxu0 %v4196_v15 }
 0x12d   : > { %v1305_v18 = vpop.f32.mrf.mxu1 }
 0x12e   : > { %v1452_v19 = vpop.f32.mrf.mxu0  ;;  %v1306_v22 = vadd.f32 %v1305_v18, %v4208_v44 }
 0x12f   : > { %v1453_v24 = vadd.f32 %v1452_v19, %v4213_v20 }
 0x130   : > { %1500 = vmatmul.bf16.vlgmr.msrb.gmra.mxu1 %v3948_v50  ;;  %1549 = vmatmul.bf16.vlgmr.msrb.gmra.mxu2 %v3948_v50  ;;  %v2080_v31 = vmax.f32 %v1306_v22, 0.0 }
 0x131   : > { %1598 = vmatmul.bf16.vlgmr.msrb.gmra.mxu3 %v3948_v50  ;;  %1647 = vmatmul.bf16.vlgmr.msra.gmra.mxu0 %v3948_v50  ;;  %v2083_v33 = vmax.f32 %v1453_v24, 0.0 }
 0x133   : > { %v1354_v21 = vpop.f32.mrf.mxu2 }
 0x134   : > { %v1403_v23 = vpop.f32.mrf.mxu3  ;;  %v1355_v35 = vadd.f32 %v1354_v21, %v4220_v26 }
 0x135   : > { %v1307_v25 = vpop.f32.mrf.mxu1  ;;  %v1404_v37 = vadd.f32 %v1403_v23, %v4224_v29 }
 0x136   : > { %v1308_v27 = vadd.f32 %v1307_v25, %v4208_v44  ;;  %v1454_v28 = vpop.f32.mrf.mxu0  ;;  %v2081_v45 = vmax.f32 %v1355_v35, 0.0 }
 0x137   : > { %v1455_v30 = vadd.f32 %v1454_v28, %v4213_v20  ;;  %v2082_v48 = vmax.f32 %v1404_v37, 0.0 }
 0x138   : > { %v2096_v32 = vmax.f32 %v1308_v27, 0.0 }
 0x139   : > { %v2099_v34 = vmax.f32 %v1455_v30, 0.0 }
 0x13a   : > { %v4228_v36 = vpack.c.bf16 %v2096_v32, %v2080_v31  ;;  %v3397_v31 = vld [vmem:[%s5458_s3 + $0x3a0] sm:$0xf] }
 0x13b   : > { %v1356_v38 = vpop.f32.mrf.mxu2  ;;  %v4231_v39 = vpack.c.bf16 %v2099_v34, %v2083_v33  ;;  %v3564_v32 = vld [vmem:[%s5458_s3 + $0x3dc] sm:$0xf0] }
 0x13c   : > { %v1357_v40 = vadd.f32 %v1356_v38, %v4220_v26  ;;  %v1405_v41 = vpop.f32.mrf.mxu3  ;;  %v3398_v35 = vor.u32 %v3564_v32, %v3397_v31  ;;  %v3271_v31 = vld [vmem:[%s5458_s3 + $0x2e0] sm:$0xf0] }
 0x13d   : > { %5463 = vst [vmem:[#allocation3_spill] sm:$0xff] %v4231_v39  ;;  %v1406_v42 = vadd.f32 %v1405_v41, %v4224_v29  ;;  %v1310_v43 = vpop.f32.mrf.mxu1  ;;  %v3399_v41 = vld [vmem:[%s5458_s3 + $0x3e0] sm:$0xf0] }
 0x13e   : > { %v2097_v46 = vmax.f32 %v1357_v40, 0.0  ;;  %v1457_v47 = vpop.f32.mrf.mxu0  ;;  %v1311_v54 = vadd.f32 %v1310_v43, %v4208_v44  ;;  %v3556_v40 = vld [vmem:[%s5458_s3 + $0x3a4] sm:$0xf]  ;;  %1688 = vmatpush.bf16.msra.mxu1 %v3398_v35  ;;  %v3277_v35 = vld [vmem:[%s5458_s3 + $0x2a8] sm:$0xf] }
 0x13f   : > { %v2098_v49 = vmax.f32 %v1406_v42, 0.0  ;;  %v1458_v56 = vadd.f32 %v1457_v47, %v4213_v20  ;;  %v3402_v43 = vor.u32 %v3556_v40, %v3399_v41  ;;  %v3205_v40 = vld [vmem:[%s5458_s3 + $0x220] sm:$0xf] }
 0x140   : > { %1505 = vmatmul.bf16.gmra.mxu1 %v3956_v57  ;;  %1554 = vmatmul.bf16.gmra.mxu2 %v3956_v57  ;;  %v4237_v51 = vpack.c.bf16 %v2097_v46, %v2081_v45  ;;  %v2112_v62 = vmax.f32 %v1311_v54, 0.0  ;;  %v3405_v45 = vld [vmem:[%s5458_s3 + $0x3a8] sm:$0xf]  ;;  %v3548_v54 = vld [vmem:[%s5458_s3 + $0x35c] sm:$0xf0] }
 0x141   : > { %1603 = vmatmul.bf16.gmra.mxu3 %v3956_v57  ;;  %1652 = vmatmul.bf16.gmra.mxu0 %v3956_v57  ;;  %v4241_v52 = vpack.c.bf16 %v2098_v49, %v2082_v48  ;;  %v2115_v1 = vmax.f32 %v1458_v56, 0.0  ;;  %v3565_v46 = vld [vmem:[%s5458_s3 + $0x3e4] sm:$0xf0]  ;;  %v3516_v41 = vld [vmem:[%s5458_s3 + $0x25c] sm:$0xf0] }
 0x142   : > { %v3406_v49 = vor.u32 %v3565_v46, %v3405_v45  ;;  %1737 = vmatpush.bf16.msra.mxu2 %v3402_v43  ;;  %v3206_v43 = vor.u32 %v3516_v41, %v3205_v40  ;;  %v3508_v46 = vld [vmem:[%s5458_s3 + $0x224] sm:$0xf] }
 0x143   : > { %v1359_v53 = vpop.f32.mrf.mxu2 }
 0x144   : > { %v1408_v55 = vpop.f32.mrf.mxu3  ;;  %v1360_v4 = vadd.f32 %v1359_v53, %v4220_v26  ;;  %v3333_v53 = vld [vmem:[%s5458_s3 + $0x320] sm:$0xf]  ;;  %1786 = vmatpush.bf16.msra.mxu3 %v3406_v49 }
 0x145   : > { %v1312_v58 = vpop.f32.mrf.mxu1  ;;  %v1409_v6 = vadd.f32 %v1408_v55, %v4224_v29 }
 0x146   : > { %v1313_v59 = vadd.f32 %v1312_v58, %v4208_v44  ;;  %v1459_v60 = vpop.f32.mrf.mxu0  ;;  %v2113_v18 = vmax.f32 %v1360_v4, 0.0  ;;  %v3334_v58 = vor.u32 %v3548_v54, %v3333_v53  ;;  %v3517_v54 = vld [vmem:[%s5458_s3 + $0x264] sm:$0xf0] }
 0x147   : > { %v1460_v61 = vadd.f32 %v1459_v60, %v4213_v20  ;;  %v2114_v22 = vmax.f32 %v1409_v6, 0.0  ;;  %v3540_v60 = vld [vmem:[%s5458_s3 + $0x324] sm:$0xf]  ;;  %v3549_v6 = vld [vmem:[%s5458_s3 + $0x364] sm:$0xf0] }
 0x148   : > { %v2128_v63 = vmax.f32 %v1313_v59, 0.0  ;;  %1689 = vmatpush.bf16.msra.mxu1 %v3334_v58 }
 0x149   : > { %v2131_v2 = vmax.f32 %v1460_v61, 0.0  ;;  %v3335_v61 = vld [vmem:[%s5458_s3 + $0x360] sm:$0xf0] }
 0x14a   : > { %v4248_v5 = vpack.c.bf16 %v2128_v63, %v2112_v62  ;;  %v3341_v62 = vld [vmem:[%s5458_s3 + $0x328] sm:$0xf]  ;;  %v3338_v4 = vor.u32 %v3540_v60, %v3335_v61  ;;  %v3500_v60 = vld [vmem:[%s5458_s3 + $0x1dc] sm:$0xf0] }
 0x14b   : > { %v1361_v9 = vpop.f32.mrf.mxu2  ;;  %v4251_v10 = vpack.c.bf16 %v2131_v2, %v2115_v1 }
 0x14c   : > { %v1362_v11 = vadd.f32 %v1361_v9, %v4220_v26  ;;  %v1410_v12 = vpop.f32.mrf.mxu3  ;;  %1738 = vmatpush.bf16.msra.mxu2 %v3338_v4 }
 0x14d   : > { %5464 = vst [vmem:[#allocation4_spill] sm:$0xff] %v4251_v10  ;;  %v1411_v13 = vadd.f32 %v1410_v12, %v4224_v29  ;;  %v1315_v14 = vpop.f32.mrf.mxu1 }
 0x14e   : > { %v2129_v19 = vmax.f32 %v1362_v11, 0.0  ;;  %v1462_v21 = vpop.f32.mrf.mxu0  ;;  %v1316_v28 = vadd.f32 %v1315_v14, %v4208_v44  ;;  %v3269_v14 = vld [vmem:[%s5458_s3 + $0x2a0] sm:$0xf] }
 0x14f   : > { %v2130_v23 = vmax.f32 %v1411_v13, 0.0  ;;  %v1463_v33 = vadd.f32 %v1462_v21, %v4213_v20  ;;  %v3342_v13 = vor.u32 %v3549_v6, %v3341_v62  ;;  %v3492_v6 = vld [vmem:[%s5458_s3 + $0x1a4] sm:$0xf] }
 0x150   : > { %1510 = vmatmul.bf16.gmra.mxu1 %v3964_v0  ;;  %1559 = vmatmul.bf16.gmra.mxu2 %v3964_v0  ;;  %v4257_v24 = vpack.c.bf16 %v2129_v19, %v2113_v18  ;;  %v2144_v47 = vmax.f32 %v1316_v28, 0.0  ;;  %v3532_v18 = vld [vmem:[%s5458_s3 + $0x2dc] sm:$0xf0] }
 0x151   : > { %1608 = vmatmul.bf16.gmra.mxu3 %v3964_v0  ;;  %1657 = vmatmul.bf16.gmra.mxu0 %v3964_v0  ;;  %v4261_v25 = vpack.c.bf16 %v2130_v23, %v2114_v22  ;;  %v2147_v55 = vmax.f32 %v1463_v33, 0.0  ;;  %v3270_v22 = vor.u32 %v3532_v18, %v3269_v14  ;;  %v3149_v14 = vld [vmem:[%s5458_s3 + $0x1a8] sm:$0xf] }
 0x152   : > { %1787 = vmatpush.bf16.msra.mxu3 %v3342_v13  ;;  %v3501_v18 = vld [vmem:[%s5458_s3 + $0x1e4] sm:$0xf0] }
 0x153   : > { %v1364_v27 = vpop.f32.mrf.mxu2  ;;  %1690 = vmatpush.bf16.msra.mxu1 %v3270_v22  ;;  %v3150_v22 = vor.u32 %v3501_v18, %v3149_v14  ;;  %v3021_v14 = vld [vmem:[%s5458_s3 + $0xa8] sm:$0xf] }
 0x154   : > { %v1413_v30 = vpop.f32.mrf.mxu3  ;;  %v1365_v59 = vadd.f32 %v1364_v27, %v4220_v26  ;;  %v3469_v18 = vld [vmem:[%s5458_s3 + $0xe4] sm:$0xf0] }
 0x155   : > { %v1317_v34 = vpop.f32.mrf.mxu1  ;;  %v1414_v1 = vadd.f32 %v1413_v30, %v4224_v29  ;;  %v3524_v30 = vld [vmem:[%s5458_s3 + $0x2a4] sm:$0xf] }
 0x156   : > { %v1318_v37 = vadd.f32 %v1317_v34, %v4208_v44  ;;  %v1464_v38 = vpop.f32.mrf.mxu0  ;;  %v2145_v23 = vmax.f32 %v1365_v59, 0.0  ;;  %v3274_v34 = vor.u32 %v3524_v30, %v3271_v31  ;;  %v3141_v59 = vld [vmem:[%s5458_s3 + $0x1a0] sm:$0xf] }
 0x157   : > { %v1465_v42 = vadd.f32 %v1464_v38, %v4213_v20  ;;  %v2146_v32 = vmax.f32 %v1414_v1, 0.0  ;;  %1691 = vmatpush.bf16.msra.mxu1 %v3206_v43  ;;  %v3142_v1 = vor.u32 %v3500_v60, %v3141_v59  ;;  %v3485_v43 = vld [vmem:[%s5458_s3 + $0x164] sm:$0xf0] }
 0x158   : > { %v2160_v48 = vmax.f32 %v1318_v37, 0.0  ;;  %v3533_v37 = vld [vmem:[%s5458_s3 + $0x2e4] sm:$0xf0]  ;;  %1739 = vmatpush.bf16.msra.mxu2 %v3274_v34  ;;  %v3079_v34 = vld [vmem:[%s5458_s3 + $0x160] sm:$0xf0] }
 0x159   : > { %v2163_v56 = vmax.f32 %v1465_v42, 0.0  ;;  %v3278_v38 = vor.u32 %v3533_v37, %v3277_v35  ;;  %v3085_v35 = vld [vmem:[%s5458_s3 + $0x128] sm:$0xf] }
 0x15a   : > { %v4301_v63 = vpack.c.bf16 %v2160_v48, %v2144_v47  ;;  %v3207_v47 = vld [vmem:[%s5458_s3 + $0x260] sm:$0xf0]  ;;  %v3213_v48 = vld [vmem:[%s5458_s3 + $0x228] sm:$0xf] }
 0x15b   : > { %v1366_v2 = vpop.f32.mrf.mxu2  ;;  %v4307_v9 = vpack.c.bf16 %v2163_v56, %v2147_v55  ;;  %1788 = vmatpush.bf16.msra.mxu3 %v3278_v38  ;;  %v3210_v53 = vor.u32 %v3508_v46, %v3207_v47  ;;  %v3214_v58 = vor.u32 %v3517_v54, %v3213_v48  ;;  %1692 = vmatpush.bf16.msra.mxu1 %v3142_v1  ;;  %v3468_v54 = vld [vmem:[%s5458_s3 + $0xdc] sm:$0xf0]  ;;  %v3015_v1 = vld [vmem:[%s5458_s3 + $0xe0] sm:$0xf0] }
 0x15c   : > { %v1367_v11 = vadd.f32 %v1366_v2, %v4220_v26  ;;  %v1415_v12 = vpop.f32.mrf.mxu3 }
 0x15d   : > { %5465 = vst [vmem:[#allocation5_spill] sm:$0xff] %v4307_v9  ;;  %v1416_v19 = vadd.f32 %v1415_v12, %v4224_v29  ;;  %v1320_v21 = vpop.f32.mrf.mxu1  ;;  %1740 = vmatpush.bf16.msra.mxu2 %v3210_v53  ;;  %v3013_v53 = vld [vmem:[%s5458_s3 + $0xa0] sm:$0xf] }
 0x15e   : > { %v2161_v27 = vmax.f32 %v1367_v11, 0.0  ;;  %v1467_v28 = vpop.f32.mrf.mxu0  ;;  %v1321_v55 = vadd.f32 %v1320_v21, %v4208_v44  ;;  %v3143_v11 = vld [vmem:[%s5458_s3 + $0x1e0] sm:$0xf0] }
 0x15f   : > { %v2162_v33 = vmax.f32 %v1416_v19, 0.0  ;;  %v1468_v61 = vadd.f32 %v1467_v28, %v4213_v20  ;;  %1789 = vmatpush.bf16.msra.mxu3 %v3214_v58  ;;  %v3146_v13 = vor.u32 %v3492_v6, %v3143_v11  ;;  %v3014_v58 = vor.u32 %v3468_v54, %v3013_v53  ;;  %v3557_v6 = vld [vmem:[%s5458_s3 + $0x3ac] sm:$0xf]  ;;  %v3558_v54 = vld [vmem:[%s5458_s3 + $0x3b4] sm:$0xf] }
 0x160   : > { %1515 = vmatmul.bf16.gmra.mxu1 %v3972_v7  ;;  %1564 = vmatmul.bf16.gmra.mxu2 %v3972_v7  ;;  %v4337_v42 = vpack.c.bf16 %v2161_v27, %v2145_v23  ;;  %v2176_v19 = vmax.f32 %v1321_v55, 0.0  ;;  %v3077_v23 = vld [vmem:[%s5458_s3 + $0x120] sm:$0xf]  ;;  %v3407_v11 = vld [vmem:[%s5458_s3 + $0x3e8] sm:$0xf0] }
 0x161   : > { %1613 = vmatmul.bf16.gmra.mxu3 %v3972_v7  ;;  %1662 = vmatmul.bf16.gmra.mxu0 %v3972_v7  ;;  %v4341_v45 = vpack.c.bf16 %v2162_v33, %v2146_v32  ;;  %v3484_v27 = vld [vmem:[%s5458_s3 + $0x15c] sm:$0xf0]  ;;  %v2179_v28 = vmax.f32 %v1468_v61, 0.0  ;;  %v3476_v33 = vld [vmem:[%s5458_s3 + $0x124] sm:$0xf] }
 0x162   : > { %v3078_v31 = vor.u32 %v3484_v27, %v3077_v23  ;;  %1741 = vmatpush.bf16.msra.mxu2 %v3146_v13  ;;  %v3082_v41 = vor.u32 %v3476_v33, %v3079_v34  ;;  %v3410_v13 = vor.u32 %v3557_v6, %v3407_v11  ;;  %v3452_v23 = vld [vmem:[%s5458_s3 + $0x5c] sm:$0xf0]  ;;  %v3343_v53 = vld [vmem:[%s5458_s3 + $0x368] sm:$0xf0]  ;;  %v3349_v6 = vld [vmem:[%s5458_s3 + $0x330] sm:$0xf] }
 0x163   : > { %v1369_v49 = vpop.f32.mrf.mxu2  ;;  %1790 = vmatpush.bf16.msra.mxu3 %v3150_v22  ;;  %v2949_v22 = vld [vmem:[%s5458_s3 + $0x20] sm:$0xf]  ;;  %v3550_v11 = vld [vmem:[%s5458_s3 + $0x36c] sm:$0xf0] }
 0x164   : > { %v1418_v56 = vpop.f32.mrf.mxu3  ;;  %v1370_v32 = vadd.f32 %v1369_v49, %v4220_v26  ;;  %1693 = vmatpush.bf16.msra.mxu1 %v3078_v31  ;;  %v3086_v49 = vor.u32 %v3485_v43, %v3085_v35  ;;  %1835 = vmatpush.bf16.msrb.mxu0 %v3410_v13  ;;  %v3566_v31 = vld [vmem:[%s5458_s3 + $0x3ec] sm:$0xf0]  ;;  %v2951_v35 = vld [vmem:[%s5458_s3 + $0x60] sm:$0xf0]  ;;  %v3350_v13 = vor.u32 %v3550_v11, %v3349_v6 }
 0x165   : > { %v1322_v62 = vpop.f32.mrf.mxu1  ;;  %v1419_v38 = vadd.f32 %v1418_v56, %v4224_v29  ;;  %v3518_v6 = vld [vmem:[%s5458_s3 + $0x26c] sm:$0xf0] }
 0x166   : > { %v1323_v2 = vadd.f32 %v1322_v62, %v4208_v44  ;;  %v1469_v4 = vpop.f32.mrf.mxu0  ;;  %v2177_v59 = vmax.f32 %v1370_v32, 0.0  ;;  %1742 = vmatpush.bf16.msra.mxu2 %v3082_v41  ;;  %v3460_v62 = vld [vmem:[%s5458_s3 + $0xa4] sm:$0xf] }
 0x167   : > { %v1470_v12 = vadd.f32 %v1469_v4, %v4213_v20  ;;  %1791 = vmatpush.bf16.msra.mxu3 %v3086_v49  ;;  %v3444_v32 = vld [vmem:[%s5458_s3 + $0x24] sm:$0xf]  ;;  %v3541_v49 = vld [vmem:[%s5458_s3 + $0x32c] sm:$0xf] }
 0x168   : > { %v2192_v21 = vmax.f32 %v1323_v2, 0.0  ;;  %v2178_v2 = vmax.f32 %v1419_v38, 0.0  ;;  %1694 = vmatpush.bf16.msra.mxu1 %v3014_v58  ;;  %v2957_v38 = vld [vmem:[%s5458_s3 + $0x28] sm:$0xf]  ;;  %v3346_v58 = vor.u32 %v3541_v49, %v3343_v53 }
 0x169   : > { %v2195_v30 = vmax.f32 %v1470_v12, 0.0  ;;  %v3018_v12 = vor.u32 %v3460_v62, %v3015_v1  ;;  %v3567_v62 = vld [vmem:[%s5458_s3 + $0x3f4] sm:$0xf0] }
 0x16a   : > { %v4393_v37 = vpack.c.bf16 %v2192_v21, %v2176_v19  ;;  %v3022_v21 = vor.u32 %v3469_v18, %v3021_v14  ;;  %1836 = vmatpush.bf16.msrb.mxu0 %v3346_v58  ;;  %v3525_v14 = vld [vmem:[%s5458_s3 + $0x2ac] sm:$0xf] }
 0x16b   : > { %v1371_v40 = vpop.f32.mrf.mxu2  ;;  %v4399_v46 = vpack.c.bf16 %v2195_v30, %v2179_v28  ;;  %1743 = vmatpush.bf16.msra.mxu2 %v3018_v12  ;;  %v2950_v28 = vor.u32 %v3452_v23, %v2949_v22  ;;  %v3413_v30 = vld [vmem:[%s5458_s3 + $0x3b0] sm:$0xf]  ;;  %v3279_v18 = vld [vmem:[%s5458_s3 + $0x2e8] sm:$0xf0] }
 0x16c   : > { %v1372_v47 = vadd.f32 %v1371_v40, %v4220_v26  ;;  %v1420_v48 = vpop.f32.mrf.mxu3  ;;  %1792 = vmatpush.bf16.msra.mxu3 %v3022_v21  ;;  %v3414_v34 = vor.u32 %v3566_v31, %v3413_v30  ;;  %v3453_v40 = vld [vmem:[%s5458_s3 + $0x64] sm:$0xf0]  ;;  %v3282_v23 = vor.u32 %v3525_v14, %v3279_v18  ;;  %v3351_v30 = vld [vmem:[%s5458_s3 + $0x370] sm:$0xf0]  ;;  %v3493_v18 = vld [vmem:[%s5458_s3 + $0x1ac] sm:$0xf] }
 0x16d   : > { %5466 = vst [vmem:[#allocation6_spill] sm:$0xff] %v4399_v46  ;;  %v1421_v55 = vadd.f32 %v1420_v48, %v4224_v29  ;;  %v1325_v56 = vpop.f32.mrf.mxu1  ;;  %1695 = vmatpush.bf16.msra.mxu1 %v2950_v28  ;;  %v2958_v48 = vor.u32 %v3453_v40, %v2957_v38  ;;  %v3542_v28 = vld [vmem:[%s5458_s3 + $0x334] sm:$0xf]  ;;  %v3551_v38 = vld [vmem:[%s5458_s3 + $0x374] sm:$0xf0] }
 0x16e   : > { %v2193_v60 = vmax.f32 %v1372_v47, 0.0  ;;  %v1472_v61 = vpop.f32.mrf.mxu0  ;;  %v1326_v41 = vadd.f32 %v1325_v56, %v4208_v44  ;;  %v2954_v47 = vor.u32 %v3444_v32, %v2951_v35  ;;  %v3357_v35 = vld [vmem:[%s5458_s3 + $0x338] sm:$0xf]  ;;  %1837 = vmatpush.bf16.msrb.mxu0 %v3282_v23  ;;  %v3510_v23 = vld [vmem:[%s5458_s3 + $0x234] sm:$0xf] }
 0x16f   : > { %v2194_v4 = vmax.f32 %v1421_v55, 0.0  ;;  %v1473_v55 = vadd.f32 %v1472_v61, %v4213_v20  ;;  %v3358_v40 = vor.u32 %v3551_v38, %v3357_v35  ;;  %v3157_v35 = vld [vmem:[%s5458_s3 + $0x1b0] sm:$0xf] }
 0x170   : > { %1520 = vmatmul.bf16.gmra.mxu1 %v3986_v17  ;;  %1569 = vmatmul.bf16.gmra.mxu2 %v3986_v17  ;;  %v4429_v19 = vpack.c.bf16 %v2193_v60, %v2177_v59  ;;  %v3415_v59 = vld [vmem:[%s5458_s3 + $0x3f0] sm:$0xf0]  ;;  %v3421_v60 = vld [vmem:[%s5458_s3 + $0x3b8] sm:$0xf]  ;;  %v2208_v21 = vmax.f32 %v1326_v41, 0.0 }
 0x171   : > { %1618 = vmatmul.bf16.gmra.mxu3 %v3986_v17  ;;  %1667 = vmatmul.bf16.gmra.mxu0 %v3986_v17  ;;  %v4439_v27 = vpack.c.bf16 %v2194_v4, %v2178_v2  ;;  %v3418_v61 = vor.u32 %v3558_v54, %v3415_v59  ;;  %v3422_v4 = vor.u32 %v3567_v62, %v3421_v60  ;;  %v2211_v31 = vmax.f32 %v1473_v55, 0.0  ;;  %v3285_v41 = vld [vmem:[%s5458_s3 + $0x2b0] sm:$0xf]  ;;  %v3509_v54 = vld [vmem:[%s5458_s3 + $0x22c] sm:$0xf] }
 0x172   : > { %1884 = vmatpush.bf16.msrb.mxu1 %v3414_v34  ;;  %1744 = vmatpush.bf16.msra.mxu2 %v2954_v47  ;;  %v3354_v34 = vor.u32 %v3542_v28, %v3351_v30  ;;  %v3534_v47 = vld [vmem:[%s5458_s3 + $0x2ec] sm:$0xf0]  ;;  %v3215_v55 = vld [vmem:[%s5458_s3 + $0x268] sm:$0xf0]  ;;  %v3287_v62 = vld [vmem:[%s5458_s3 + $0x2f0] sm:$0xf0] }
 0x173   : > { %v4450_v33 = vpop.f32.mrf.mxu2  ;;  %1793 = vmatpush.bf16.msra.mxu3 %v2958_v48  ;;  %v3286_v53 = vor.u32 %v3534_v47, %v3285_v41  ;;  %v3218_v60 = vor.u32 %v3509_v54, %v3215_v55  ;;  %v3223_v28 = vld [vmem:[%s5458_s3 + $0x270] sm:$0xf0]  ;;  %v3229_v30 = vld [vmem:[%s5458_s3 + $0x238] sm:$0xf]  ;;  %v3502_v38 = vld [vmem:[%s5458_s3 + $0x1ec] sm:$0xf0] }
 0x174   : > { %v4462_v43 = vpop.f32.mrf.mxu3  ;;  %v3158_v41 = vor.u32 %v3502_v38, %v3157_v35  ;;  %v3477_v47 = vld [vmem:[%s5458_s3 + $0x12c] sm:$0xf]  ;;  %v3494_v54 = vld [vmem:[%s5458_s3 + $0x1b4] sm:$0xf]  ;;  %v3101_v35 = vld [vmem:[%s5458_s3 + $0x138] sm:$0xf] }
 0x175   : > { %v1327_v56 = vpop.f32.mrf.mxu1  ;;  %1838 = vmatpush.bf16.msrb.mxu0 %v3218_v60  ;;  %v3159_v60 = vld [vmem:[%s5458_s3 + $0x1f0] sm:$0xf0]  ;;  %v3487_v38 = vld [vmem:[%s5458_s3 + $0x174] sm:$0xf0] }
 0x176   : > { %v1328_v1 = vadd.f32 %v1327_v56, %v4208_v44  ;;  %v1474_v2 = vpop.f32.mrf.mxu0  ;;  %1933 = vmatpush.bf16.msrb.mxu2 %v3418_v61  ;;  %1885 = vmatpush.bf16.msrb.mxu1 %v3350_v13  ;;  %v3526_v56 = vld [vmem:[%s5458_s3 + $0x2b4] sm:$0xf] }
 0x177   : > { %v1475_v12 = vadd.f32 %v1474_v2, %v4213_v20  ;;  %1982 = vmatpush.bf16.msrb.mxu3 %v3422_v4  ;;  %v3535_v2 = vld [vmem:[%s5458_s3 + $0x2f4] sm:$0xf0]  ;;  %v3221_v4 = vld [vmem:[%s5458_s3 + $0x230] sm:$0xf] }
 0x178   : > { %v2224_v22 = vmax.f32 %v1328_v1, 0.0  ;;  %v3293_v1 = vld [vmem:[%s5458_s3 + $0x2b8] sm:$0xf]  ;;  %v3222_v14 = vor.u32 %v3518_v6, %v3221_v4  ;;  %v3093_v6 = vld [vmem:[%s5458_s3 + $0x130] sm:$0xf] }
 0x179   : > { %v2227_v32 = vmax.f32 %v1475_v12, 0.0  ;;  %v3290_v12 = vor.u32 %v3526_v56, %v3287_v62  ;;  %v3294_v13 = vor.u32 %v3535_v2, %v3293_v1  ;;  %v3165_v62 = vld [vmem:[%s5458_s3 + $0x1b8] sm:$0xf] }
 0x17a   : > { %v4515_v48 = vpack.c.bf16 %v2224_v22, %v2208_v21  ;;  %1934 = vmatpush.bf16.msrb.mxu2 %v3354_v34  ;;  %1886 = vmatpush.bf16.msrb.mxu1 %v3286_v53  ;;  %v3151_v21 = vld [vmem:[%s5458_s3 + $0x1e8] sm:$0xf0]  ;;  %v3503_v1 = vld [vmem:[%s5458_s3 + $0x1f4] sm:$0xf0] }
 0x17b   : > { %v4517_v49 = vpop.f32.mrf.mxu2  ;;  %v4528_v58 = vpack.c.bf16 %v2227_v32, %v2211_v31  ;;  %1983 = vmatpush.bf16.msrb.mxu3 %v3358_v40  ;;  %v3154_v22 = vor.u32 %v3493_v18, %v3151_v21  ;;  %v3519_v31 = vld [vmem:[%s5458_s3 + $0x274] sm:$0xf0]  ;;  %v3226_v32 = vor.u32 %v3510_v23, %v3223_v28  ;;  %v3087_v53 = vld [vmem:[%s5458_s3 + $0x168] sm:$0xf0]  ;;  %v3166_v18 = vor.u32 %v3503_v1, %v3165_v62 }
 0x17c   : > { %v4530_v59 = vpop.f32.mrf.mxu3  ;;  %v3230_v34 = vor.u32 %v3519_v31, %v3229_v30  ;;  %v3090_v56 = vor.u32 %v3477_v47, %v3087_v53  ;;  %v3023_v23 = vld [vmem:[%s5458_s3 + $0xe8] sm:$0xf0]  ;;  %v3478_v30 = vld [vmem:[%s5458_s3 + $0x134] sm:$0xf]  ;;  %v3102_v47 = vor.u32 %v3487_v38, %v3101_v35  ;;  %v3029_v53 = vld [vmem:[%s5458_s3 + $0xb0] sm:$0xf] }
 0x17d   : > { %5467 = vst [vmem:[#allocation7_spill] sm:$0xff] %v4528_v58  ;;  %v4541_v61 = vpop.f32.mrf.mxu1  ;;  %1839 = vmatpush.bf16.msrb.mxu0 %v3154_v22  ;;  %v3461_v22 = vld [vmem:[%s5458_s3 + $0xac] sm:$0xf]  ;;  %v3095_v31 = vld [vmem:[%s5458_s3 + $0x170] sm:$0xf0] }
 0x17e   : > { %v1477_v11 = vpop.f32.mrf.mxu0  ;;  %1935 = vmatpush.bf16.msrb.mxu2 %v3290_v12  ;;  %1887 = vmatpush.bf16.msrb.mxu1 %v3222_v14  ;;  %v3486_v12 = vld [vmem:[%s5458_s3 + $0x16c] sm:$0xf0]  ;;  %v3162_v14 = vor.u32 %v3494_v54, %v3159_v60  ;;  %v3026_v28 = vor.u32 %v3461_v22, %v3023_v23  ;;  %v3445_v62 = vld [vmem:[%s5458_s3 + $0x2c] sm:$0xf]  ;;  %v2967_v35 = vld [vmem:[%s5458_s3 + $0x70] sm:$0xf0] }
 0x17f   : > { %1984 = vmatpush.bf16.msrb.mxu3 %v3294_v13  ;;  %v1478_v2 = vadd.f32 %v1477_v11, %v4213_v20  ;;  %v3094_v11 = vor.u32 %v3486_v12, %v3093_v6  ;;  %v3470_v54 = vld [vmem:[%s5458_s3 + $0xec] sm:$0xf0]  ;;  %v2959_v1 = vld [vmem:[%s5458_s3 + $0x68] sm:$0xf0]  ;;  %v2973_v38 = vld [vmem:[%s5458_s3 + $0x38] sm:$0xf] }
 0x180   : > { %1525 = vmatmul.bf16.gmra.mxu1 %v4084_v8  ;;  %1574 = vmatmul.bf16.gmra.mxu2 %v4084_v8  ;;  %v3030_v60 = vor.u32 %v3470_v54, %v3029_v53  ;;  %v2965_v22 = vld [vmem:[%s5458_s3 + $0x30] sm:$0xf] }
 0x181   : > { %1623 = vmatmul.bf16.gmra.mxu3 %v4084_v8  ;;  %1672 = vmatmul.bf16.gmra.mxu0 %v4084_v8  ;;  %v3454_v23 = vld [vmem:[%s5458_s3 + $0x6c] sm:$0xf0] }
 0x182   : > { %1936 = vmatpush.bf16.msrb.mxu2 %v3226_v32  ;;  %1888 = vmatpush.bf16.msrb.mxu1 %v3158_v41  ;;  %v2243_v32 = vmax.f32 %v1478_v2, 0.0  ;;  %v3098_v41 = vor.u32 %v3478_v30, %v3095_v31  ;;  %v3462_v2 = vld [vmem:[%s5458_s3 + $0xb4] sm:$0xf] }
 0x183   : > { %v4577_v40 = vpop.f32.mrf.mxu2  ;;  %1985 = vmatpush.bf16.msrb.mxu3 %v3230_v34  ;;  %1840 = vmatpush.bf16.msrb.mxu0 %v3090_v56 }
 0x184   : > { %v4588_v55 = vpop.f32.mrf.mxu3 }
 0x185   : > { %v4600_v4 = vpop.f32.mrf.mxu1 }
 0x186   : > { %v1479_v13 = vpop.f32.mrf.mxu0  ;;  %1937 = vmatpush.bf16.msrb.mxu2 %v3162_v14  ;;  %1889 = vmatpush.bf16.msrb.mxu1 %v3094_v11  ;;  %v3031_v14 = vld [vmem:[%s5458_s3 + $0xf0] sm:$0xf0] }
 0x187   : > { %v1480_v21 = vadd.f32 %v1479_v13, %v4213_v20  ;;  %1986 = vmatpush.bf16.msrb.mxu3 %v3166_v18  ;;  %1841 = vmatpush.bf16.msrb.mxu0 %v3026_v28  ;;  %v2962_v13 = vor.u32 %v3445_v62, %v2959_v1  ;;  %v3037_v18 = vld [vmem:[%s5458_s3 + $0xb8] sm:$0xf]  ;;  %v3034_v30 = vor.u32 %v3462_v2, %v3031_v14 }
 0x189   : > { %v2259_v34 = vmax.f32 %v1480_v21, 0.0  ;;  %v3471_v21 = vld [vmem:[%s5458_s3 + $0xf4] sm:$0xf0] }
 0x18a   : > { %1938 = vmatpush.bf16.msrb.mxu2 %v3098_v41  ;;  %v3038_v31 = vor.u32 %v3471_v21, %v3037_v18  ;;  %1890 = vmatpush.bf16.msrb.mxu1 %v3030_v60  ;;  %v3455_v41 = vld [vmem:[%s5458_s3 + $0x74] sm:$0xf0] }
 0x18b   : > { %v4633_v56 = vpop.f32.mrf.mxu2  ;;  %v4644_v6 = vpack.c.bf16 %v2259_v34, %v2243_v32  ;;  %1987 = vmatpush.bf16.msrb.mxu3 %v3102_v47  ;;  %1842 = vmatpush.bf16.msrb.mxu0 %v2962_v13  ;;  %v2966_v32 = vor.u32 %v3454_v23, %v2965_v22  ;;  %v3446_v34 = vld [vmem:[%s5458_s3 + $0x34] sm:$0xf]  ;;  %v2974_v53 = vor.u32 %v3455_v41, %v2973_v38 }
 0x18c   : > { %v4646_v12 = vpop.f32.mrf.mxu3  ;;  %v2970_v47 = vor.u32 %v3446_v34, %v2967_v35 }
 0x18d   : > { %5468 = vst [vmem:[#allocation8_spill] sm:$0xff] %v4644_v6  ;;  %v4657_v11 = vpop.f32.mrf.mxu1 }
 0x18e   : > { %v1482_v28 = vpop.f32.mrf.mxu0  ;;  %1939 = vmatpush.bf16.msrb.mxu2 %v3034_v30  ;;  %1891 = vmatpush.bf16.msrb.mxu1 %v2966_v32 }
 0x18f   : > { %1988 = vmatpush.bf16.msrb.mxu3 %v3038_v31  ;;  %v1483_v62 = vadd.f32 %v1482_v28, %v4213_v20 }
 0x190   : > { %1530 = vmatmul.bf16.gmra.mxu1 %v4185_v3  ;;  %1579 = vmatmul.bf16.gmra.mxu2 %v4185_v3 }
 0x191   : > { %1628 = vmatmul.bf16.gmra.mxu3 %v4185_v3  ;;  %1677 = vmatmul.bf16.gmra.mxu0 %v4185_v3  ;;  %v2275_v14 = vmax.f32 %v1483_v62, 0.0 }
 0x192   : > { %1940 = vmatpush.bf16.msrb.mxu2 %v2970_v47 }
 0x193   : > { %v1384_v54 = vpop.f32.mrf.mxu2  ;;  %1989 = vmatpush.bf16.msrb.mxu3 %v2974_v53 }
 0x194   : > { %v1433_v60 = vpop.f32.mrf.mxu3 }
 0x195   : > { %v1337_v1 = vpop.f32.mrf.mxu1 }
 0x196   : > { %v1484_v2 = vpop.f32.mrf.mxu0 }
 0x197   : > { %v1485_v13 = vadd.f32 %v1484_v2, %v4213_v20  ;;  %v4694_v2 = vadd.f32 %v4450_v33, %v4220_v26  ;;  %v1338_v33 = vadd.f32 %v1337_v1, %v4208_v44  ;;  %v1385_v1 = vadd.f32 %v1384_v54, %v4220_v26 }
 0x198   : > { %v1431_v54 = vadd.f32 %v4646_v12, %v4224_v29 }
 0x199   : > { %v2291_v18 = vmax.f32 %v1485_v13, 0.0  ;;  %v2288_v58 = vmax.f32 %v1338_v33, 0.0 }
 0x19b   : > { %v1386_v21 = vpop.f32.mrf.mxu2  ;;  %v4683_v22 = vpack.c.bf16 %v2291_v18, %v2275_v14  ;;  %v4700_v18 = vadd.f32 %v4462_v43, %v4224_v29  ;;  %v4714_v43 = vadd.f32 %v4633_v56, %v4220_v26  ;;  %v4723_v56 = vperm.slane %v4205_v16, 4 }
 0x19c   : > { %v1435_v23 = vpop.f32.mrf.mxu3 }
 0x19d   : > { %v1340_v30 = vpop.f32.mrf.mxu1 }
 0x19e   : > { %v1487_v31 = vpop.f32.mrf.mxu0  ;;  %v1341_v13 = vadd.f32 %v1340_v30, %v4208_v44 }
 0x19f   : > { %v1488_v34 = vadd.f32 %v1487_v31, %v4213_v20  ;;  %v4704_v31 = vadd.f32 %v4600_v4, %v4208_v44  ;;  %v1336_v4 = vadd.f32 %v4657_v11, %v4208_v44 }
 0x1a0   : > { %1535 = vmatmul.bf16.gmra.mxu1 %v4196_v15  ;;  %1584 = vmatmul.bf16.gmra.mxu2 %v4196_v15  ;;  %v2304_v39 = vmax.f32 %v1341_v13, 0.0 }
 0x1a1   : > { %1633 = vmatmul.bf16.gmra.mxu3 %v4196_v15  ;;  %1682 = vmatmul.bf16.gmra.mxu0 %v4196_v15  ;;  %v2307_v53 = vmax.f32 %v1488_v34, 0.0  ;;  %v2272_v33 = vmax.f32 %v1336_v4, 0.0  ;;  %v2256_v12 = vmax.f32 %v4704_v31, 0.0 }
 0x1a3   : > { %v1389_v28 = vpop.f32.mrf.mxu2 }
 0x1a4   : > { %v1438_v32 = vpop.f32.mrf.mxu3  ;;  %v1390_v14 = vadd.f32 %v1389_v28, %v4220_v26 }
 0x1a5   : > { %v1342_v35 = vpop.f32.mrf.mxu1 }
 0x1a6   : > { %v1489_v38 = vpop.f32.mrf.mxu0  ;;  %v1343_v47 = vadd.f32 %v1342_v35, %v4208_v44 }
 0x1a7   : > { %v1490_v41 = vadd.f32 %v1489_v38, %v4213_v20  ;;  %v1439_v20 = vadd.f32 %v1438_v32, %v4224_v29  ;;  %v1387_v38 = vadd.f32 %v1386_v21, %v4220_v26  ;;  %v1436_v32 = vadd.f32 %v1435_v23, %v4224_v29 }
 0x1a8   : > { %v2320_v30 = vmax.f32 %v1343_v47, 0.0  ;;  %v2305_v21 = vmax.f32 %v1390_v14, 0.0 }
 0x1a9   : > { %v2323_v62 = vmax.f32 %v1490_v41, 0.0  ;;  %v2306_v9 = vmax.f32 %v1439_v20, 0.0  ;;  %v2289_v11 = vmax.f32 %v1387_v38, 0.0  ;;  %v2290_v13 = vmax.f32 %v1436_v32, 0.0 }
 0x1aa   : > { %v2450_v6 = vpack.c.bf16 %v2320_v30, %v2304_v39  ;;  %v1331_v39 = vadd.f32 %v4541_v61, %v4208_v44  ;;  %v1380_v20 = vadd.f32 %v4577_v40, %v4220_v26  ;;  %v2273_v38 = vmax.f32 %v1385_v1, 0.0 }
 0x1ab   : > { %v4707_v34 = vpack.c.bf16 %v2323_v62, %v2307_v53  ;;  %v1391_v35 = vpop.f32.mrf.mxu2  ;;  %v2257_v44 = vmax.f32 %v4714_v43, 0.0  ;;  %v2258_v32 = vmax.f32 %v1431_v54, 0.0  ;;  %v4749_v1 = vperm.slane %v4205_v16, 5 }
 0x1ac   : > { %v1392_v28 = vadd.f32 %v1391_v35, %v4220_v26  ;;  %v1440_v41 = vpop.f32.mrf.mxu3  ;;  %v1434_v35 = vadd.f32 %v1433_v60, %v4224_v29  ;;  %v4730_v60 = vperm.slane %v4205_v16, 7  ;;  %v2435_v4 = vpack.c.bf16 %v2289_v11, %v2273_v38 }
 0x1ad   : > { %v1441_v53 = vadd.f32 %v1440_v41, %v4224_v29  ;;  %v1501_v62 = vpop.f32.mrf.mxu1  ;;  %v2434_v41 = vpack.c.bf16 %v2288_v58, %v2272_v33  ;;  %v2241_v31 = vmax.f32 %v1380_v20, 0.0 }
 0x1ae   : > { %v2321_v47 = vmax.f32 %v1392_v28, 0.0  ;;  %v1648_v10 = vpop.f32.mrf.mxu0  ;;  %v2274_v30 = vmax.f32 %v1434_v35, 0.0  ;;  %v1502_v61 = vadd.f32 %v1501_v62, %v4723_v56 }
 0x1af   : > { %v2322_v46 = vmax.f32 %v1441_v53, 0.0  ;;  %v2240_v53 = vmax.f32 %v1331_v39, 0.0  ;;  %v2419_v11 = vpack.c.bf16 %v2257_v44, %v2241_v31  ;;  %v2209_v39 = vmax.f32 %v4694_v2, 0.0 }
 0x1b0   : > { %v2451_v23 = vpack.c.bf16 %v2321_v47, %v2305_v21  ;;  %1696 = vmatmul.bf16.vlgmr.msra.gmra.mxu1 %v3948_v50  ;;  %1745 = vmatmul.bf16.vlgmr.msra.gmra.mxu2 %v3948_v50  ;;  %v4753_v47 = vperm.slane %v4205_v16, 6  ;;  %v2210_v16 = vmax.f32 %v4700_v18, 0.0 }
 0x1b1   : > { %v2452_v14 = vpack.c.bf16 %v2322_v46, %v2306_v9  ;;  %1794 = vmatmul.bf16.vlgmr.msra.gmra.mxu3 %v3948_v50  ;;  %1843 = vmatmul.bf16.vlgmr.msrb.gmra.mxu0 %v3948_v50  ;;  %v1377_v9 = vadd.f32 %v4517_v49, %v4220_v26  ;;  %v1429_v46 = vadd.f32 %v4588_v55, %v4224_v29 }
 0x1b2   : > { %2466 = vmatpush.bf16.msra.mxu1 %v2450_v6  ;;  %2479 = vmatpush.bf16.msra.mxu2 %v2451_v23  ;;  %v1426_v6 = vadd.f32 %v4530_v59, %v4224_v29  ;;  %v1649_v26 = vadd.f32 %v1648_v10, %v4730_v60  ;;  %v2436_v55 = vpack.c.bf16 %v2290_v13, %v2274_v30  ;;  %v2084_v10 = vmax.f32 %v1502_v61, 0.0 }
 0x1b3   : > { %2492 = vmatpush.bf16.msra.mxu3 %v2452_v14  ;;  %v1550_v28 = vpop.f32.mrf.mxu2  ;;  %v2225_v58 = vmax.f32 %v1377_v9, 0.0  ;;  %v2242_v21 = vmax.f32 %v1429_v46, 0.0  ;;  %v2418_v35 = vpack.c.bf16 %v2256_v12, %v2240_v53 }
 0x1b4   : > { %v1599_v40 = vpop.f32.mrf.mxu3  ;;  %v2226_v23 = vmax.f32 %v1426_v6, 0.0  ;;  %v2087_v54 = vmax.f32 %v1649_v26, 0.0  ;;  %v1551_v20 = vadd.f32 %v1550_v28, %v4749_v1 }
 0x1b5   : > { %v1503_v49 = vpop.f32.mrf.mxu1  ;;  %v2420_v14 = vpack.c.bf16 %v2258_v32, %v2242_v21  ;;  %v1600_v38 = vadd.f32 %v1599_v40, %v4753_v47  ;;  %v2403_v44 = vpack.c.bf16 %v2225_v58, %v2209_v39 }
 0x1b6   : > { %2467 = vmatpush.bf16.msra.mxu1 %v2434_v41  ;;  %v1504_v43 = vadd.f32 %v1503_v49, %v4723_v56  ;;  %v1650_v62 = vpop.f32.mrf.mxu0  ;;  %2480 = vmatpush.bf16.msra.mxu2 %v2435_v4  ;;  %v2404_v28 = vpack.c.bf16 %v2226_v23, %v2210_v16  ;;  %v2085_v41 = vmax.f32 %v1551_v20, 0.0 }
 0x1b7   : > { %v1651_v29 = vadd.f32 %v1650_v62, %v4730_v60  ;;  %2493 = vmatpush.bf16.msra.mxu3 %v2436_v55  ;;  %v2086_v18 = vmax.f32 %v1600_v38, 0.0 }
 0x1b8   : > { %v2100_v59 = vmax.f32 %v1504_v43, 0.0 }
 0x1b9   : > { %v2103_v13 = vmax.f32 %v1651_v29, 0.0 }
 0x1ba   : > { %2468 = vmatpush.bf16.msra.mxu1 %v2418_v35  ;;  %2481 = vmatpush.bf16.msra.mxu2 %v2419_v11  ;;  %v4758_v33 = vpack.c.bf16 %v2100_v59, %v2084_v10 }
 0x1bb   : > { %2494 = vmatpush.bf16.msra.mxu3 %v2420_v14  ;;  %v1552_v9 = vpop.f32.mrf.mxu2  ;;  %v4762_v46 = vpack.c.bf16 %v2103_v13, %v2087_v54 }
 0x1bc   : > { %v1553_v12 = vadd.f32 %v1552_v9, %v4749_v1  ;;  %v1601_v30 = vpop.f32.mrf.mxu3 }
 0x1bd   : > { %5469 = vst [vmem:[#allocation9_spill] sm:$0xff] %v4762_v46  ;;  %v1602_v2 = vadd.f32 %v1601_v30, %v4753_v47  ;;  %v1506_v61 = vpop.f32.mrf.mxu1 }
 0x1be   : > { %v2101_v4 = vmax.f32 %v1553_v12, 0.0  ;;  %2469 = vmatpush.bf16.msra.mxu1 %v4515_v48  ;;  %v1653_v6 = vpop.f32.mrf.mxu0  ;;  %2482 = vmatpush.bf16.msra.mxu2 %v2403_v44  ;;  %v1507_v49 = vadd.f32 %v1506_v61, %v4723_v56 }
 0x1bf   : > { %v2102_v40 = vmax.f32 %v1602_v2, 0.0  ;;  %2495 = vmatpush.bf16.msra.mxu3 %v2404_v28  ;;  %v1654_v53 = vadd.f32 %v1653_v6, %v4730_v60 }
 0x1c0   : > { %1701 = vmatmul.bf16.gmra.mxu1 %v3956_v57  ;;  %1750 = vmatmul.bf16.gmra.mxu2 %v3956_v57  ;;  %v4769_v32 = vpack.c.bf16 %v2101_v4, %v2085_v41 }
 0x1c1   : > { %1799 = vmatmul.bf16.gmra.mxu3 %v3956_v57  ;;  %1848 = vmatmul.bf16.gmra.mxu0 %v3956_v57  ;;  %v4773_v26 = vpack.c.bf16 %v2102_v40, %v2086_v18  ;;  %v2119_v58 = vmax.f32 %v1654_v53, 0.0 }
 0x1c2   : > { %2470 = vmatpush.bf16.msra.mxu1 %v4393_v37  ;;  %2483 = vmatpush.bf16.msra.mxu2 %v4429_v19  ;;  %v2116_v19 = vmax.f32 %v1507_v49, 0.0 }
 0x1c3   : > { %5470 = vst [vmem:[#allocation10_spill] sm:$0xff] %v4773_v26  ;;  %2496 = vmatpush.bf16.msra.mxu3 %v4439_v27  ;;  %v1555_v48 = vpop.f32.mrf.mxu2 }
 0x1c4   : > { %v1604_v55 = vpop.f32.mrf.mxu3  ;;  %v1556_v29 = vadd.f32 %v1555_v48, %v4749_v1 }
 0x1c5   : > { %v1508_v31 = vpop.f32.mrf.mxu1  ;;  %v1605_v10 = vadd.f32 %v1604_v55, %v4753_v47 }
 0x1c6   : > { %2471 = vmatpush.bf16.msra.mxu1 %v4301_v63  ;;  %v1509_v43 = vadd.f32 %v1508_v31, %v4723_v56  ;;  %v1655_v62 = vpop.f32.mrf.mxu0  ;;  %2484 = vmatpush.bf16.msra.mxu2 %v4337_v42  ;;  %v2117_v54 = vmax.f32 %v1556_v29, 0.0 }
 0x1c7   : > { %v1656_v37 = vadd.f32 %v1655_v62, %v4730_v60  ;;  %2497 = vmatpush.bf16.msra.mxu3 %v4341_v45 }
 0x1c8   : > { %v2132_v27 = vmax.f32 %v1509_v43, 0.0 }
 0x1c9   : > { %v2135_v21 = vmax.f32 %v1656_v37, 0.0 }
 0x1ca   : > { %2472 = vmatpush.bf16.msra.mxu1 %v4248_v5  ;;  %2485 = vmatpush.bf16.msra.mxu2 %v4257_v24  ;;  %v4788_v63 = vpack.c.bf16 %v2132_v27, %v2116_v19  ;;  %v2118_v24 = vmax.f32 %v1605_v10, 0.0 }
 0x1cb   : > { %2498 = vmatpush.bf16.msra.mxu3 %v4261_v25  ;;  %v1557_v42 = vpop.f32.mrf.mxu2  ;;  %v4792_v59 = vpack.c.bf16 %v2135_v21, %v2119_v58 }
 0x1cc   : > { %v1558_v45 = vadd.f32 %v1557_v42, %v4749_v1  ;;  %v1606_v35 = vpop.f32.mrf.mxu3 }
 0x1cd   : > { %5471 = vst [vmem:[#allocation11_spill] sm:$0xff] %v4792_v59  ;;  %v1607_v11 = vadd.f32 %v1606_v35, %v4753_v47  ;;  %v1511_v23 = vpop.f32.mrf.mxu1 }
 0x1ce   : > { %v2133_v13 = vmax.f32 %v1558_v45, 0.0  ;;  %2473 = vmatpush.bf16.msra.mxu1 %v4228_v36  ;;  %v1658_v5 = vpop.f32.mrf.mxu0  ;;  %2486 = vmatpush.bf16.msra.mxu2 %v4237_v51  ;;  %v1512_v20 = vadd.f32 %v1511_v23, %v4723_v56 }
 0x1cf   : > { %v2134_v14 = vmax.f32 %v1607_v11, 0.0  ;;  %2499 = vmatpush.bf16.msra.mxu3 %v4241_v52  ;;  %v1659_v16 = vadd.f32 %v1658_v5, %v4730_v60 }
 0x1d0   : > { %1706 = vmatmul.bf16.gmra.mxu1 %v3964_v0  ;;  %1755 = vmatmul.bf16.gmra.mxu2 %v3964_v0  ;;  %v4801_v25 = vpack.c.bf16 %v2133_v13, %v2117_v54  ;;  %v2148_v30 = vmax.f32 %v1512_v20, 0.0 }
 0x1d1   : > { %1804 = vmatmul.bf16.gmra.mxu3 %v3964_v0  ;;  %1853 = vmatmul.bf16.gmra.mxu0 %v3964_v0  ;;  %v4805_v39 = vpack.c.bf16 %v2134_v14, %v2118_v24  ;;  %v2151_v2 = vmax.f32 %v1659_v16, 0.0 }
 0x1d3   : > { %v1560_v36 = vpop.f32.mrf.mxu2 }
 0x1d4   : > { %v1609_v51 = vpop.f32.mrf.mxu3  ;;  %v1561_v28 = vadd.f32 %v1560_v36, %v4749_v1 }
 0x1d5   : > { %v1513_v38 = vpop.f32.mrf.mxu1  ;;  %v1610_v4 = vadd.f32 %v1609_v51, %v4753_v47 }
 0x1d6   : > { %v1514_v52 = vadd.f32 %v1513_v38, %v4723_v56  ;;  %v1660_v9 = vpop.f32.mrf.mxu0  ;;  %v2149_v53 = vmax.f32 %v1561_v28, 0.0  ;;  %v3559_v28 = vld [vmem:[%s5458_s3 + $0x3bc] sm:$0xf] }
 0x1d7   : > { %v1661_v12 = vadd.f32 %v1660_v9, %v4730_v60  ;;  %v2150_v62 = vmax.f32 %v1610_v4, 0.0  ;;  %v3423_v4 = vld [vmem:[%s5458_s3 + $0x3f8] sm:$0xf0] }
 0x1d8   : > { %v2164_v44 = vmax.f32 %v1514_v52, 0.0 }
 0x1d9   : > { %v2167_v61 = vmax.f32 %v1661_v12, 0.0 }
 0x1da   : > { %v4812_v41 = vpack.c.bf16 %v2164_v44, %v2148_v30 }
 0x1db   : > { %v1562_v6 = vpop.f32.mrf.mxu2  ;;  %v4815_v18 = vpack.c.bf16 %v2167_v61, %v2151_v2 }
 0x1dc   : > { %v1563_v40 = vadd.f32 %v1562_v6, %v4749_v1  ;;  %v1611_v48 = vpop.f32.mrf.mxu3  ;;  %v3426_v6 = vor.u32 %v3559_v28, %v3423_v4  ;;  %v3495_v28 = vld [vmem:[%s5458_s3 + $0x1bc] sm:$0xf] }
 0x1dd   : > { %v1612_v49 = vadd.f32 %v1611_v48, %v4753_v47  ;;  %v1516_v55 = vpop.f32.mrf.mxu1  ;;  %v3167_v4 = vld [vmem:[%s5458_s3 + $0x1f8] sm:$0xf0] }
 0x1de   : > { %v2165_v31 = vmax.f32 %v1563_v40, 0.0  ;;  %v1663_v43 = vpop.f32.mrf.mxu0  ;;  %v1517_v21 = vadd.f32 %v1516_v55, %v4723_v56  ;;  %2031 = vmatpush.bf16.msra.mxu0 %v3426_v6  ;;  %v3170_v6 = vor.u32 %v3495_v28, %v3167_v4 }
 0x1df   : > { %v2166_v37 = vmax.f32 %v1612_v49, 0.0  ;;  %v1664_v10 = vadd.f32 %v1663_v43, %v4730_v60  ;;  %v3359_v43 = vld [vmem:[%s5458_s3 + $0x378] sm:$0xf0] }
 0x1e0   : > { %1711 = vmatmul.bf16.gmra.mxu1 %v3972_v7  ;;  %1760 = vmatmul.bf16.gmra.mxu2 %v3972_v7  ;;  %v4821_v19 = vpack.c.bf16 %v2165_v31, %v2149_v53  ;;  %v2180_v23 = vmax.f32 %v1517_v21, 0.0  ;;  %v3543_v31 = vld [vmem:[%s5458_s3 + $0x33c] sm:$0xf] }
 0x1e1   : > { %1809 = vmatmul.bf16.gmra.mxu3 %v3972_v7  ;;  %1858 = vmatmul.bf16.gmra.mxu0 %v3972_v7  ;;  %v4825_v27 = vpack.c.bf16 %v2166_v37, %v2150_v62  ;;  %v2183_v13 = vmax.f32 %v1664_v10, 0.0 }
 0x1e3   : > { %v1565_v58 = vpop.f32.mrf.mxu2 }
 0x1e4   : > { %v1614_v29 = vpop.f32.mrf.mxu3  ;;  %v1566_v24 = vadd.f32 %v1565_v58, %v4749_v1  ;;  %v3362_v58 = vor.u32 %v3543_v31, %v3359_v43  ;;  %v3479_v43 = vld [vmem:[%s5458_s3 + $0x13c] sm:$0xf] }
 0x1e5   : > { %v1518_v42 = vpop.f32.mrf.mxu1  ;;  %v1615_v36 = vadd.f32 %v1614_v29, %v4753_v47 }
 0x1e6   : > { %v1519_v45 = vadd.f32 %v1518_v42, %v4723_v56  ;;  %v1665_v35 = vpop.f32.mrf.mxu0  ;;  %v2181_v12 = vmax.f32 %v1566_v24, 0.0  ;;  %2032 = vmatpush.bf16.msra.mxu0 %v3362_v58 }
 0x1e7   : > { %v1666_v11 = vadd.f32 %v1665_v35, %v4730_v60  ;;  %v2182_v2 = vmax.f32 %v1615_v36, 0.0  ;;  %v3527_v35 = vld [vmem:[%s5458_s3 + $0x2bc] sm:$0xf] }
 0x1e8   : > { %v2196_v54 = vmax.f32 %v1519_v45, 0.0 }
 0x1e9   : > { %v2199_v5 = vmax.f32 %v1666_v11, 0.0  ;;  %v3295_v11 = vld [vmem:[%s5458_s3 + $0x2f8] sm:$0xf0] }
 0x1ea   : > { %v4832_v14 = vpack.c.bf16 %v2196_v54, %v2180_v23 }
 0x1eb   : > { %v1567_v20 = vpop.f32.mrf.mxu2  ;;  %v4835_v51 = vpack.c.bf16 %v2199_v5, %v2183_v13  ;;  %v3298_v13 = vor.u32 %v3527_v35, %v3295_v11 }
 0x1ec   : > { %v1568_v16 = vadd.f32 %v1567_v20, %v4749_v1  ;;  %v1616_v38 = vpop.f32.mrf.mxu3 }
 0x1ed   : > { %v1617_v52 = vadd.f32 %v1616_v38, %v4753_v47  ;;  %v1521_v9 = vpop.f32.mrf.mxu1  ;;  %2033 = vmatpush.bf16.msra.mxu0 %v3298_v13  ;;  %v3511_v38 = vld [vmem:[%s5458_s3 + $0x23c] sm:$0xf] }
 0x1ee   : > { %v2197_v30 = vmax.f32 %v1568_v16, 0.0  ;;  %v1668_v44 = vpop.f32.mrf.mxu0  ;;  %v1522_v55 = vadd.f32 %v1521_v9, %v4723_v56 }
 0x1ef   : > { %v2198_v61 = vmax.f32 %v1617_v52, 0.0  ;;  %v1669_v62 = vadd.f32 %v1668_v44, %v4730_v60  ;;  %v3231_v52 = vld [vmem:[%s5458_s3 + $0x278] sm:$0xf0] }
 0x1f0   : > { %1716 = vmatmul.bf16.gmra.mxu1 %v3986_v17  ;;  %1765 = vmatmul.bf16.gmra.mxu2 %v3986_v17  ;;  %v4847_v40 = vpack.c.bf16 %v2197_v30, %v2181_v12  ;;  %v2212_v42 = vmax.f32 %v1522_v55, 0.0  ;;  %v3234_v30 = vor.u32 %v3511_v38, %v3231_v52  ;;  %v3447_v38 = vld [vmem:[%s5458_s3 + $0x3c] sm:$0xf] }
 0x1f1   : > { %1814 = vmatmul.bf16.gmra.mxu3 %v3986_v17  ;;  %1863 = vmatmul.bf16.gmra.mxu0 %v3986_v17  ;;  %v4851_v48 = vpack.c.bf16 %v2198_v61, %v2182_v2  ;;  %v2215_v23 = vmax.f32 %v1669_v62, 0.0  ;;  %v3103_v62 = vld [vmem:[%s5458_s3 + $0x178] sm:$0xf0] }
 0x1f2   : > { %2034 = vmatpush.bf16.msra.mxu0 %v3234_v30  ;;  %v2975_v52 = vld [vmem:[%s5458_s3 + $0x78] sm:$0xf0] }
 0x1f3   : > { %v4853_v49 = vpop.f32.mrf.mxu2 }
 0x1f4   : > { %v1619_v53 = vpop.f32.mrf.mxu3 }
 0x1f5   : > { %v1523_v37 = vpop.f32.mrf.mxu1  ;;  %v1620_v24 = vadd.f32 %v1619_v53, %v4753_v47 }
 0x1f6   : > { %v1524_v21 = vadd.f32 %v1523_v37, %v4723_v56  ;;  %v1670_v29 = vpop.f32.mrf.mxu0  ;;  %2035 = vmatpush.bf16.msra.mxu0 %v3170_v6 }
 0x1f7   : > { %v1671_v10 = vadd.f32 %v1670_v29, %v4730_v60  ;;  %v2214_v2 = vmax.f32 %v1620_v24, 0.0 }
 0x1f8   : > { %v2228_v45 = vmax.f32 %v1524_v21, 0.0  ;;  %v3106_v21 = vor.u32 %v3479_v43, %v3103_v62 }
 0x1f9   : > { %v2231_v54 = vmax.f32 %v1671_v10, 0.0 }
 0x1fa   : > { %v4871_v5 = vpack.c.bf16 %v2228_v45, %v2212_v42  ;;  %2036 = vmatpush.bf16.msra.mxu0 %v3106_v21  ;;  %v3463_v42 = vld [vmem:[%s5458_s3 + $0xbc] sm:$0xf] }
 0x1fb   : > { %v4874_v36 = vpop.f32.mrf.mxu2  ;;  %v4876_v20 = vpack.c.bf16 %v2231_v54, %v2215_v23  ;;  %v3039_v45 = vld [vmem:[%s5458_s3 + $0xf8] sm:$0xf0] }
 0x1fc   : > { %v1621_v16 = vpop.f32.mrf.mxu3  ;;  %v3042_v23 = vor.u32 %v3463_v42, %v3039_v45 }
 0x1fd   : > { %v1622_v9 = vadd.f32 %v1621_v16, %v4753_v47  ;;  %v4885_v12 = vpop.f32.mrf.mxu1 }
 0x1fe   : > { %v1673_v44 = vpop.f32.mrf.mxu0  ;;  %2037 = vmatpush.bf16.msra.mxu0 %v3042_v23 }
 0x1ff   : > { %v2230_v61 = vmax.f32 %v1622_v9, 0.0  ;;  %v1674_v37 = vadd.f32 %v1673_v44, %v4730_v60  ;;  %v2978_v44 = vor.u32 %v3447_v38, %v2975_v52 }
 0x200   : > { %1721 = vmatmul.bf16.gmra.mxu1 %v4084_v8  ;;  %1770 = vmatmul.bf16.gmra.mxu2 %v4084_v8 }
 0x201   : > { %1819 = vmatmul.bf16.gmra.mxu3 %v4084_v8  ;;  %1868 = vmatmul.bf16.gmra.mxu0 %v4084_v8  ;;  %v4897_v55 = vpack.c.bf16 %v2230_v61, %v2214_v2  ;;  %v2247_v35 = vmax.f32 %v1674_v37, 0.0 }
 0x202   : > { %2038 = vmatpush.bf16.msra.mxu0 %v2978_v44 }
 0x203   : > { %v4899_v53 = vpop.f32.mrf.mxu2 }
 0x204   : > { %v1624_v31 = vpop.f32.mrf.mxu3 }
 0x205   : > { %v4908_v58 = vpop.f32.mrf.mxu1  ;;  %v1625_v54 = vadd.f32 %v1624_v31, %v4753_v47 }
 0x206   : > { %v1675_v29 = vpop.f32.mrf.mxu0 }
 0x207   : > { %v1676_v10 = vadd.f32 %v1675_v29, %v4730_v60  ;;  %v2246_v61 = vmax.f32 %v1625_v54, 0.0 }
 0x209   : > { %v2263_v11 = vmax.f32 %v1676_v10, 0.0 }
 0x20b   : > { %v4918_v13 = vpop.f32.mrf.mxu2  ;;  %v4920_v24 = vpack.c.bf16 %v2263_v11, %v2247_v35 }
 0x20c   : > { %v1626_v16 = vpop.f32.mrf.mxu3 }
 0x20d   : > { %v1627_v9 = vadd.f32 %v1626_v16, %v4753_v47  ;;  %v1531_v30 = vpop.f32.mrf.mxu1 }
 0x20e   : > { %v1678_v2 = vpop.f32.mrf.mxu0 }
 0x20f   : > { %v2262_v28 = vmax.f32 %v1627_v9, 0.0  ;;  %v1679_v43 = vadd.f32 %v1678_v2, %v4730_v60 }
 0x210   : > { %1726 = vmatmul.bf16.gmra.mxu1 %v4185_v3  ;;  %1775 = vmatmul.bf16.gmra.mxu2 %v4185_v3 }
 0x211   : > { %1824 = vmatmul.bf16.gmra.mxu3 %v4185_v3  ;;  %1873 = vmatmul.bf16.gmra.mxu0 %v4185_v3  ;;  %v4933_v4 = vpack.c.bf16 %v2262_v28, %v2246_v61  ;;  %v2279_v29 = vmax.f32 %v1679_v43, 0.0 }
 0x213   : > { %v1580_v6 = vpop.f32.mrf.mxu2 }
 0x214   : > { %v1629_v31 = vpop.f32.mrf.mxu3 }
 0x215   : > { %v1533_v62 = vpop.f32.mrf.mxu1  ;;  %v1630_v42 = vadd.f32 %v1629_v31, %v4753_v47 }
 0x216   : > { %v1680_v37 = vpop.f32.mrf.mxu0 }
 0x217   : > { %v1681_v21 = vadd.f32 %v1680_v37, %v4730_v60  ;;  %v2278_v38 = vmax.f32 %v1630_v42, 0.0 }
 0x219   : > { %v2295_v10 = vmax.f32 %v1681_v21, 0.0 }
 0x21b   : > { %v1582_v45 = vpop.f32.mrf.mxu2  ;;  %v4938_v35 = vpack.c.bf16 %v2295_v10, %v2279_v29 }
 0x21c   : > { %v1631_v11 = vpop.f32.mrf.mxu3 }
 0x21d   : > { %v1632_v23 = vadd.f32 %v1631_v11, %v4753_v47  ;;  %v1536_v54 = vpop.f32.mrf.mxu1 }
 0x21e   : > { %v1683_v16 = vpop.f32.mrf.mxu0  ;;  %v1537_v10 = vadd.f32 %v1536_v54, %v4723_v56  ;;  %v4962_v54 = vld [vmem:[%s5459_s4 + $0x8] sm:$0xff] }
 0x21f   : > { %v2294_v52 = vmax.f32 %v1632_v23, 0.0  ;;  %v1684_v61 = vadd.f32 %v1683_v16, %v4730_v60  ;;  %v4969_v59 = vperm.slane %v4962_v54, 0 }
 0x220   : > { %1731 = vmatmul.bf16.gmra.mxu1 %v4196_v15  ;;  %1780 = vmatmul.bf16.gmra.mxu2 %v4196_v15 }
 0x221   : > { %1829 = vmatmul.bf16.gmra.mxu3 %v4196_v15  ;;  %1878 = vmatmul.bf16.gmra.mxu0 %v4196_v15  ;;  %v4945_v9 = vpack.c.bf16 %v2294_v52, %v2278_v38  ;;  %v2311_v21 = vmax.f32 %v1684_v61, 0.0  ;;  %v1534_v52 = vadd.f32 %v1533_v62, %v4723_v56 }
 0x223   : > { %v1585_v44 = vpop.f32.mrf.mxu2 }
 0x224   : > { %v1634_v2 = vpop.f32.mrf.mxu3  ;;  %v1586_v42 = vadd.f32 %v1585_v44, %v4749_v1 }
 0x225   : > { %v1538_v28 = vpop.f32.mrf.mxu1  ;;  %v1635_v11 = vadd.f32 %v1634_v2, %v4753_v47  ;;  %v1532_v2 = vadd.f32 %v1531_v30, %v4723_v56 }
 0x226   : > { %v1685_v31 = vpop.f32.mrf.mxu0  ;;  %v1539_v37 = vadd.f32 %v1538_v28, %v4723_v56  ;;  %v2308_v28 = vmax.f32 %v1537_v10, 0.0 }
 0x227   : > { %v1686_v43 = vadd.f32 %v1685_v31, %v4730_v60  ;;  %v1583_v60 = vadd.f32 %v1582_v45, %v4749_v1  ;;  %v2309_v31 = vmax.f32 %v1586_v42, 0.0  ;;  %v2310_v45 = vmax.f32 %v1635_v11, 0.0 }
 0x228   : > { %v2324_v16 = vmax.f32 %v1539_v37, 0.0  ;;  %v1529_v37 = vadd.f32 %v4908_v58, %v4723_v56  ;;  %v4978_v58 = vperm.slane %v4962_v54, 3  ;;  %v2276_v42 = vmax.f32 %v1532_v2, 0.0 }
 0x229   : > { %v2327_v29 = vmax.f32 %v1686_v43, 0.0  ;;  %v2293_v30 = vmax.f32 %v1583_v60, 0.0 }
 0x22b   : > { %v4953_v23 = vpack.c.bf16 %v2327_v29, %v2311_v21  ;;  %v1587_v38 = vpop.f32.mrf.mxu2  ;;  %v1581_v21 = vadd.f32 %v1580_v6, %v4749_v1  ;;  %v1527_v6 = vadd.f32 %v4885_v12, %v4723_v56 }
 0x22c   : > { %v1588_v46 = vadd.f32 %v1587_v38, %v4749_v1  ;;  %v1636_v26 = vpop.f32.mrf.mxu3 }
 0x22d   : > { %v1637_v61 = vadd.f32 %v1636_v26, %v4753_v47  ;;  %v1697_v44 = vpop.f32.mrf.mxu1  ;;  %v2292_v47 = vmax.f32 %v1534_v52, 0.0  ;;  %v2454_v26 = vpack.c.bf16 %v2324_v16, %v2308_v28  ;;  %v2277_v11 = vmax.f32 %v1581_v21, 0.0 }
 0x22e   : > { %v2325_v43 = vmax.f32 %v1588_v46, 0.0  ;;  %v1844_v62 = vpop.f32.mrf.mxu0  ;;  %v1578_v46 = vadd.f32 %v4918_v13, %v4749_v1  ;;  %v1576_v13 = vadd.f32 %v4899_v53, %v4749_v1  ;;  %v2260_v16 = vmax.f32 %v1529_v37, 0.0 }
 0x22f   : > { %v2326_v29 = vmax.f32 %v1637_v61, 0.0  ;;  %v1698_v60 = vadd.f32 %v1697_v44, %v4969_v59  ;;  %v2438_v28 = vpack.c.bf16 %v2292_v47, %v2276_v42  ;;  %v1845_v56 = vadd.f32 %v1844_v62, %v4978_v58 }
 0x230   : > { %v2455_v38 = vpack.c.bf16 %v2325_v43, %v2309_v31  ;;  %1892 = vmatmul.bf16.vlgmr.msrb.gmra.mxu1 %v3948_v50  ;;  %1941 = vmatmul.bf16.vlgmr.msrb.gmra.mxu2 %v3948_v50  ;;  %v2261_v31 = vmax.f32 %v1578_v46, 0.0  ;;  %v2244_v2 = vmax.f32 %v1527_v6, 0.0  ;;  %v4992_v43 = vperm.slane %v4962_v54, 1  ;;  %v5472_v6 = vld [vmem:[#allocation8_spill] sm:$0xff] }
 0x231   : > { %v4975_v10 = vpack.c.bf16 %v2326_v29, %v2310_v45  ;;  %1990 = vmatmul.bf16.vlgmr.msrb.gmra.mxu3 %v3948_v50  ;;  %2039 = vmatmul.bf16.vlgmr.msra.gmra.mxu0 %v3948_v50  ;;  %v1573_v50 = vadd.f32 %v4874_v36, %v4749_v1  ;;  %v1571_v37 = vadd.f32 %v4853_v49, %v4749_v1  ;;  %v2245_v21 = vmax.f32 %v1576_v13, 0.0 }
 0x232   : > { %2505 = vmatpush.bf16.msrb.mxu1 %v4707_v34  ;;  %2518 = vmatpush.bf16.msrb.mxu2 %v2454_v26  ;;  %v2439_v34 = vpack.c.bf16 %v2293_v30, %v2277_v11  ;;  %v4999_v36 = vperm.slane %v4962_v54, 2  ;;  %v2088_v45 = vmax.f32 %v1698_v60, 0.0  ;;  %v2422_v47 = vpack.c.bf16 %v2260_v16, %v2244_v2 }
 0x233   : > { %2531 = vmatpush.bf16.msrb.mxu3 %v2455_v38  ;;  %v1746_v52 = vpop.f32.mrf.mxu2  ;;  %v2229_v26 = vmax.f32 %v1573_v50, 0.0  ;;  %v2091_v38 = vmax.f32 %v1845_v56, 0.0  ;;  %v2423_v46 = vpack.c.bf16 %v2261_v31, %v2245_v21  ;;  %v2213_v49 = vmax.f32 %v1571_v37, 0.0  ;;  %v5477_v37 = vld [vmem:[#allocation6_spill] sm:$0xff] }
 0x234   : > { %v1795_v61 = vpop.f32.mrf.mxu3  ;;  %v1747_v30 = vadd.f32 %v1746_v52, %v4992_v43 }
 0x235   : > { %v1699_v12 = vpop.f32.mrf.mxu1  ;;  %v1796_v42 = vadd.f32 %v1795_v61, %v4999_v36  ;;  %v2407_v31 = vpack.c.bf16 %v2229_v26, %v2213_v49 }
 0x236   : > { %2506 = vmatpush.bf16.msrb.mxu1 %v4683_v22  ;;  %2519 = vmatpush.bf16.msrb.mxu2 %v2438_v28  ;;  %v1700_v53 = vadd.f32 %v1699_v12, %v4969_v59  ;;  %v1846_v44 = vpop.f32.mrf.mxu0  ;;  %v2089_v52 = vmax.f32 %v1747_v30, 0.0  ;;  %v5474_v12 = vld [vmem:[#allocation7_spill] sm:$0xff] }
 0x237   : > { %v1847_v62 = vadd.f32 %v1846_v44, %v4978_v58  ;;  %2532 = vmatpush.bf16.msrb.mxu3 %v2439_v34  ;;  %v2090_v2 = vmax.f32 %v1796_v42, 0.0 }
 0x238   : > { %v2104_v29 = vmax.f32 %v1700_v53, 0.0 }
 0x239   : > { %v2107_v22 = vmax.f32 %v1847_v62, 0.0 }
 0x23a   : > { %2507 = vmatpush.bf16.msrb.mxu1 %v5472_v6  ;;  %2520 = vmatpush.bf16.msrb.mxu2 %v2422_v47  ;;  %v5004_v1 = vpack.c.bf16 %v2104_v29, %v2088_v45  ;;  %v5478_v47 = vld [vmem:[#allocation5_spill] sm:$0xff]  ;;  %v5479_v6 = vld [vmem:[#allocation4_spill] sm:$0xff] }
 0x23b   : > { %2533 = vmatpush.bf16.msrb.mxu3 %v2423_v46  ;;  %v1748_v13 = vpop.f32.mrf.mxu2  ;;  %v5007_v11 = vpack.c.bf16 %v2107_v22, %v2091_v38 }
 0x23c   : > { %v1749_v16 = vadd.f32 %v1748_v13, %v4992_v43  ;;  %v1797_v60 = vpop.f32.mrf.mxu3 }
 0x23d   : > { %5473 = vst [vmem:[#allocation8_spill] sm:$0xff] %v5007_v11  ;;  %v1798_v28 = vadd.f32 %v1797_v60, %v4999_v36  ;;  %v1702_v50 = vpop.f32.mrf.mxu1 }
 0x23e   : > { %v2105_v56 = vmax.f32 %v1749_v16, 0.0  ;;  %2508 = vmatpush.bf16.msrb.mxu1 %v5474_v12  ;;  %2521 = vmatpush.bf16.msrb.mxu2 %v4871_v5  ;;  %v1849_v34 = vpop.f32.mrf.mxu0  ;;  %v1703_v21 = vadd.f32 %v1702_v50, %v4969_v59 }
 0x23f   : > { %v2106_v61 = vmax.f32 %v1798_v28, 0.0  ;;  %2534 = vmatpush.bf16.msrb.mxu3 %v2407_v31  ;;  %v1850_v45 = vadd.f32 %v1849_v34, %v4978_v58 }
 0x240   : > { %1897 = vmatmul.bf16.gmra.mxu1 %v3956_v57  ;;  %1946 = vmatmul.bf16.gmra.mxu2 %v3956_v57  ;;  %v5015_v53 = vpack.c.bf16 %v2105_v56, %v2089_v52  ;;  %v5481_v52 = vld [vmem:[#allocation3_spill] sm:$0xff] }
 0x241   : > { %1995 = vmatmul.bf16.gmra.mxu3 %v3956_v57  ;;  %2044 = vmatmul.bf16.gmra.mxu0 %v3956_v57  ;;  %v5019_v44 = vpack.c.bf16 %v2106_v61, %v2090_v2  ;;  %v2123_v22 = vmax.f32 %v1850_v45, 0.0 }
 0x242   : > { %5475 = vst [vmem:[#allocation7_spill] sm:$0xff] %v5015_v53  ;;  %2509 = vmatpush.bf16.msrb.mxu1 %v5477_v37  ;;  %2522 = vmatpush.bf16.msrb.mxu2 %v4832_v14  ;;  %v2120_v14 = vmax.f32 %v1703_v21, 0.0 }
 0x243   : > { %5476 = vst [vmem:[#allocation12_spill] sm:$0xff] %v5019_v44  ;;  %2535 = vmatpush.bf16.msrb.mxu3 %v4847_v40  ;;  %v1751_v5 = vpop.f32.mrf.mxu2 }
 0x244   : > { %v1800_v62 = vpop.f32.mrf.mxu3  ;;  %v1752_v30 = vadd.f32 %v1751_v5, %v4992_v43 }
 0x245   : > { %v1704_v29 = vpop.f32.mrf.mxu1 }
 0x246   : > { %2510 = vmatpush.bf16.msrb.mxu1 %v5478_v47  ;;  %2523 = vmatpush.bf16.msrb.mxu2 %v4812_v41  ;;  %v1705_v57 = vadd.f32 %v1704_v29, %v4969_v59  ;;  %v1851_v26 = vpop.f32.mrf.mxu0  ;;  %v1801_v41 = vadd.f32 %v1800_v62, %v4999_v36  ;;  %v2121_v50 = vmax.f32 %v1752_v30, 0.0 }
 0x247   : > { %v1852_v38 = vadd.f32 %v1851_v26, %v4978_v58  ;;  %2536 = vmatpush.bf16.msrb.mxu3 %v4821_v19 }
 0x248   : > { %v2136_v40 = vmax.f32 %v1705_v57, 0.0  ;;  %v2122_v56 = vmax.f32 %v1801_v41, 0.0 }
 0x249   : > { %v2139_v46 = vmax.f32 %v1852_v38, 0.0 }
 0x24a   : > { %2511 = vmatpush.bf16.msrb.mxu1 %v5479_v6  ;;  %2524 = vmatpush.bf16.msrb.mxu2 %v4788_v63  ;;  %v5034_v49 = vpack.c.bf16 %v2136_v40, %v2120_v14 }
 0x24b   : > { %2537 = vmatpush.bf16.msrb.mxu3 %v4801_v25  ;;  %v1753_v42 = vpop.f32.mrf.mxu2  ;;  %v5038_v13 = vpack.c.bf16 %v2139_v46, %v2123_v22 }
 0x24c   : > { %v1754_v19 = vadd.f32 %v1753_v42, %v4992_v43  ;;  %v1802_v16 = vpop.f32.mrf.mxu3 }
 0x24d   : > { %5480 = vst [vmem:[#allocation6_spill] sm:$0xff] %v5038_v13  ;;  %v1803_v60 = vadd.f32 %v1802_v16, %v4999_v36  ;;  %v1707_v28 = vpop.f32.mrf.mxu1 }
 0x24e   : > { %v2137_v31 = vmax.f32 %v1754_v19, 0.0  ;;  %2512 = vmatpush.bf16.msrb.mxu1 %v5481_v52  ;;  %2525 = vmatpush.bf16.msrb.mxu2 %v4758_v33  ;;  %v1854_v63 = vpop.f32.mrf.mxu0  ;;  %v1708_v33 = vadd.f32 %v1707_v28, %v4969_v59 }
 0x24f   : > { %v2138_v12 = vmax.f32 %v1803_v60, 0.0  ;;  %2538 = vmatpush.bf16.msrb.mxu3 %v4769_v32  ;;  %v1855_v37 = vadd.f32 %v1854_v63, %v4978_v58 }
 0x250   : > { %1902 = vmatmul.bf16.gmra.mxu1 %v3964_v0  ;;  %1951 = vmatmul.bf16.gmra.mxu2 %v3964_v0  ;;  %v5047_v25 = vpack.c.bf16 %v2137_v31, %v2121_v50  ;;  %v2152_v45 = vmax.f32 %v1708_v33, 0.0 }
 0x251   : > { %2000 = vmatmul.bf16.gmra.mxu3 %v3964_v0  ;;  %2049 = vmatmul.bf16.gmra.mxu0 %v3964_v0  ;;  %v5051_v34 = vpack.c.bf16 %v2138_v12, %v2122_v56  ;;  %v2155_v47 = vmax.f32 %v1855_v37, 0.0 }
 0x252   : > { %5482 = vst [vmem:[#allocation5_spill] sm:$0xff] %v5047_v25 }
 0x253   : > { %5483 = vst [vmem:[#allocation4_spill] sm:$0xff] %v5051_v34  ;;  %v1756_v2 = vpop.f32.mrf.mxu2 }
 0x254   : > { %v1805_v61 = vpop.f32.mrf.mxu3  ;;  %v1757_v0 = vadd.f32 %v1756_v2, %v4992_v43 }
 0x255   : > { %v1709_v5 = vpop.f32.mrf.mxu1  ;;  %v1806_v38 = vadd.f32 %v1805_v61, %v4999_v36 }
 0x256   : > { %v1710_v32 = vadd.f32 %v1709_v5, %v4969_v59  ;;  %v1856_v21 = vpop.f32.mrf.mxu0  ;;  %v2153_v41 = vmax.f32 %v1757_v0, 0.0 }
 0x257   : > { %v1857_v62 = vadd.f32 %v1856_v21, %v4978_v58  ;;  %v2154_v16 = vmax.f32 %v1806_v38, 0.0 }
 0x258   : > { %v2168_v29 = vmax.f32 %v1710_v32, 0.0 }
 0x259   : > { %v2171_v57 = vmax.f32 %v1857_v62, 0.0 }
 0x25a   : > { %v5058_v26 = vpack.c.bf16 %v2168_v29, %v2152_v45 }
 0x25b   : > { %v1758_v14 = vpop.f32.mrf.mxu2  ;;  %v5061_v40 = vpack.c.bf16 %v2171_v57, %v2155_v47 }
 0x25c   : > { %v1759_v22 = vadd.f32 %v1758_v14, %v4992_v43  ;;  %v1807_v46 = vpop.f32.mrf.mxu3 }
 0x25d   : > { %5484 = vst [vmem:[#allocation3_spill] sm:$0xff] %v5061_v40  ;;  %v1808_v30 = vadd.f32 %v1807_v46, %v4999_v36  ;;  %v1712_v6 = vpop.f32.mrf.mxu1 }
 0x25e   : > { %v2169_v42 = vmax.f32 %v1759_v22, 0.0  ;;  %v1859_v19 = vpop.f32.mrf.mxu0  ;;  %v1713_v52 = vadd.f32 %v1712_v6, %v4969_v59 }
 0x25f   : > { %v2170_v60 = vmax.f32 %v1808_v30, 0.0  ;;  %v1860_v56 = vadd.f32 %v1859_v19, %v4978_v58 }
 0x260   : > { %1907 = vmatmul.bf16.gmra.mxu1 %v3972_v7  ;;  %1956 = vmatmul.bf16.gmra.mxu2 %v3972_v7  ;;  %v5067_v28 = vpack.c.bf16 %v2169_v42, %v2153_v41  ;;  %v2184_v37 = vmax.f32 %v1713_v52, 0.0 }
 0x261   : > { %2005 = vmatmul.bf16.gmra.mxu3 %v3972_v7  ;;  %2054 = vmatmul.bf16.gmra.mxu0 %v3972_v7  ;;  %v5071_v50 = vpack.c.bf16 %v2170_v60, %v2154_v16  ;;  %v2187_v32 = vmax.f32 %v1860_v56, 0.0 }
 0x263   : > { %5485 = vst [vmem:[#allocation13_spill] sm:$0xff] %v5071_v50  ;;  %v1761_v31 = vpop.f32.mrf.mxu2  ;;  %v5461_v50 = vmov 1065369472  }
 0x264   : > { %v1810_v63 = vpop.f32.mrf.mxu3  ;;  %v1762_v7 = vadd.f32 %v1761_v31, %v4992_v43 }
 0x265   : > { %v1714_v12 = vpop.f32.mrf.mxu1  ;;  %v1811_v45 = vadd.f32 %v1810_v63, %v4999_v36 }
 0x266   : > { %v1715_v2 = vadd.f32 %v1714_v12, %v4969_v59  ;;  %v1861_v33 = vpop.f32.mrf.mxu0  ;;  %v2185_v22 = vmax.f32 %v1762_v7, 0.0 }
 0x267   : > { %v1862_v61 = vadd.f32 %v1861_v33, %v4978_v58  ;;  %v2186_v6 = vmax.f32 %v1811_v45, 0.0 }
 0x268   : > { %v2200_v5 = vmax.f32 %v1715_v2, 0.0 }
 0x269   : > { %v2203_v21 = vmax.f32 %v1862_v61, 0.0 }
 0x26a   : > { %v5078_v62 = vpack.c.bf16 %v2200_v5, %v2184_v37 }
 0x26b   : > { %v1763_v29 = vpop.f32.mrf.mxu2  ;;  %v5081_v47 = vpack.c.bf16 %v2203_v21, %v2187_v32 }
 0x26c   : > { %v1764_v57 = vadd.f32 %v1763_v29, %v4992_v43  ;;  %v1812_v0 = vpop.f32.mrf.mxu3 }
 0x26d   : > { %v1813_v38 = vadd.f32 %v1812_v0, %v4999_v36  ;;  %v1717_v14 = vpop.f32.mrf.mxu1 }
 0x26e   : > { %v2201_v46 = vmax.f32 %v1764_v57, 0.0  ;;  %v5085_v30 = vpop.f32.mrf.mxu0  ;;  %v1718_v60 = vadd.f32 %v1717_v14, %v4969_v59 }
 0x26f   : > { %v2202_v41 = vmax.f32 %v1813_v38, 0.0 }
 0x270   : > { %1912 = vmatmul.bf16.gmra.mxu1 %v3986_v17  ;;  %1961 = vmatmul.bf16.gmra.mxu2 %v3986_v17  ;;  %v5089_v42 = vpack.c.bf16 %v2201_v46, %v2185_v22  ;;  %v2216_v12 = vmax.f32 %v1718_v60, 0.0 }
 0x271   : > { %2010 = vmatmul.bf16.gmra.mxu3 %v3986_v17  ;;  %2059 = vmatmul.bf16.gmra.mxu0 %v3986_v17  ;;  %v5093_v19 = vpack.c.bf16 %v2202_v41, %v2186_v6 }
 0x273   : > { %v1766_v16 = vpop.f32.mrf.mxu2 }
 0x274   : > { %v1815_v31 = vpop.f32.mrf.mxu3  ;;  %v1767_v33 = vadd.f32 %v1766_v16, %v4992_v43 }
 0x275   : > { %v1719_v52 = vpop.f32.mrf.mxu1  ;;  %v1816_v37 = vadd.f32 %v1815_v31, %v4999_v36 }
 0x276   : > { %v1720_v63 = vadd.f32 %v1719_v52, %v4969_v59  ;;  %v5097_v56 = vpop.f32.mrf.mxu0  ;;  %v2217_v45 = vmax.f32 %v1767_v33, 0.0 }
 0x277   : > { %v2218_v0 = vmax.f32 %v1816_v37, 0.0 }
 0x278   : > { %v2232_v2 = vmax.f32 %v1720_v63, 0.0 }
 0x27a   : > { %v5100_v61 = vpack.c.bf16 %v2232_v2, %v2216_v12 }
 0x27b   : > { %v1768_v17 = vpop.f32.mrf.mxu2 }
 0x27c   : > { %v1769_v5 = vadd.f32 %v1768_v17, %v4992_v43  ;;  %v1817_v32 = vpop.f32.mrf.mxu3 }
 0x27d   : > { %v1818_v21 = vadd.f32 %v1817_v32, %v4999_v36  ;;  %v5105_v7 = vpop.f32.mrf.mxu1 }
 0x27e   : > { %v2233_v29 = vmax.f32 %v1769_v5, 0.0  ;;  %v1869_v57 = vpop.f32.mrf.mxu0 }
 0x27f   : > { %v2234_v38 = vmax.f32 %v1818_v21, 0.0  ;;  %v1870_v41 = vadd.f32 %v1869_v57, %v4978_v58 }
 0x280   : > { %1917 = vmatmul.bf16.gmra.mxu1 %v4084_v8  ;;  %1966 = vmatmul.bf16.gmra.mxu2 %v4084_v8  ;;  %v5109_v14 = vpack.c.bf16 %v2233_v29, %v2217_v45 }
 0x281   : > { %2015 = vmatmul.bf16.gmra.mxu3 %v4084_v8  ;;  %2064 = vmatmul.bf16.gmra.mxu0 %v4084_v8  ;;  %v5113_v22 = vpack.c.bf16 %v2234_v38, %v2218_v0  ;;  %v2251_v52 = vmax.f32 %v1870_v41, 0.0 }
 0x283   : > { %v1771_v46 = vpop.f32.mrf.mxu2 }
 0x284   : > { %v1820_v6 = vpop.f32.mrf.mxu3  ;;  %v1772_v12 = vadd.f32 %v1771_v46, %v4992_v43 }
 0x285   : > { %v1724_v16 = vpop.f32.mrf.mxu1  ;;  %v1821_v2 = vadd.f32 %v1820_v6, %v4999_v36 }
 0x286   : > { %v1871_v60 = vpop.f32.mrf.mxu0  ;;  %v2249_v21 = vmax.f32 %v1772_v12, 0.0  ;;  %v1725_v34 = vadd.f32 %v1724_v16, %v4969_v59 }
 0x287   : > { %v1872_v31 = vadd.f32 %v1871_v60, %v4978_v58  ;;  %v2250_v57 = vmax.f32 %v1821_v2, 0.0 }
 0x288   : > { %v2264_v16 = vmax.f32 %v1725_v34, 0.0 }
 0x289   : > { %v2267_v63 = vmax.f32 %v1872_v31, 0.0 }
 0x28b   : > { %v5119_v33 = vpack.c.bf16 %v2267_v63, %v2251_v52  ;;  %v1773_v37 = vpop.f32.mrf.mxu2 }
 0x28c   : > { %v1774_v8 = vadd.f32 %v1773_v37, %v4992_v43  ;;  %v1822_v17 = vpop.f32.mrf.mxu3 }
 0x28d   : > { %v1823_v5 = vadd.f32 %v1822_v17, %v4999_v36  ;;  %v1727_v32 = vpop.f32.mrf.mxu1 }
 0x28e   : > { %v2265_v45 = vmax.f32 %v1774_v8, 0.0  ;;  %v5123_v29 = vpop.f32.mrf.mxu0 }
 0x28f   : > { %v2266_v0 = vmax.f32 %v1823_v5, 0.0 }
 0x290   : > { %1922 = vmatmul.bf16.gmra.mxu1 %v4185_v3  ;;  %1971 = vmatmul.bf16.gmra.mxu2 %v4185_v3  ;;  %v5127_v38 = vpack.c.bf16 %v2265_v45, %v2249_v21 }
 0x291   : > { %2020 = vmatmul.bf16.gmra.mxu3 %v4185_v3  ;;  %2069 = vmatmul.bf16.gmra.mxu0 %v4185_v3  ;;  %v5131_v46 = vpack.c.bf16 %v2266_v0, %v2250_v57 }
 0x293   : > { %v5133_v6 = vpop.f32.mrf.mxu2 }
 0x294   : > { %v5135_v41 = vpop.f32.mrf.mxu3 }
 0x295   : > { %v1729_v60 = vpop.f32.mrf.mxu1 }
 0x296   : > { %v5137_v31 = vpop.f32.mrf.mxu0  ;;  %v1730_v57 = vadd.f32 %v1729_v60, %v4969_v59 }
 0x298   : > { %v2296_v25 = vmax.f32 %v1730_v57, 0.0 }
 0x29b   : > { %v5139_v52 = vpop.f32.mrf.mxu2 }
 0x29c   : > { %v5141_v63 = vpop.f32.mrf.mxu3 }
 0x29d   : > { %v1732_v12 = vpop.f32.mrf.mxu1 }
 0x29e   : > { %v5143_v2 = vpop.f32.mrf.mxu0  ;;  %v1733_v21 = vadd.f32 %v1732_v12, %v4969_v59  ;;  %v5165_v12 = vperm.slane %v4962_v54, 7 }
 0x2a0   : > { %1927 = vmatmul.bf16.gmra.mxu1 %v4196_v15  ;;  %1976 = vmatmul.bf16.gmra.mxu2 %v4196_v15  ;;  %v2312_v53 = vmax.f32 %v1733_v21, 0.0 }
 0x2a1   : > { %2025 = vmatmul.bf16.gmra.mxu3 %v4196_v15  ;;  %2074 = vmatmul.bf16.gmra.mxu0 %v4196_v15  ;;  %v1728_v15 = vadd.f32 %v1727_v32, %v4969_v59  ;;  %v1723_v32 = vadd.f32 %v5105_v7, %v4969_v59 }
 0x2a3   : > { %v5149_v3 = vpop.f32.mrf.mxu2  ;;  %v2280_v60 = vmax.f32 %v1728_v15, 0.0  ;;  %v5208_v15 = vadd.f32 %v5133_v6, %v4992_v43 }
 0x2a4   : > { %v5151_v37 = vpop.f32.mrf.mxu3 }
 0x2a5   : > { %v1734_v8 = vpop.f32.mrf.mxu1 }
 0x2a6   : > { %v5153_v17 = vpop.f32.mrf.mxu0  ;;  %v1735_v5 = vadd.f32 %v1734_v8, %v4969_v59 }
 0x2a8   : > { %v2328_v0 = vmax.f32 %v1735_v5, 0.0  ;;  %v2442_v5 = vpack.c.bf16 %v2296_v25, %v2280_v60 }
 0x2aa   : > { %v2458_v40 = vpack.c.bf16 %v2328_v0, %v2312_v53 }
 0x2ab   : > { %v1783_v45 = vpop.f32.mrf.mxu2 }
 0x2ac   : > { %v1832_v11 = vpop.f32.mrf.mxu3 }
 0x2ad   : > { %v5158_v44 = vpop.f32.mrf.mxu1 }
 0x2ae   : > { %v2040_v13 = vpop.f32.mrf.mxu0 }
 0x2af   : > { %v2041_v21 = vadd.f32 %v2040_v13, %v5165_v12 }
 0x2b0   : > { %2474 = vmatmul.bf16.vlgmr.msra.gmra.mxu1 %v5461_v50  ;;  %2487 = vmatmul.bf16.vlgmr.msra.gmra.mxu2 %v5461_v50 }
 0x2b1   : > { %2500 = vmatmul.bf16.vlgmr.msra.gmra.mxu3 %v5461_v50  ;;  %2544 = vmatpush.bf16.msra.mxu1 %v4975_v10  ;;  %v2248_v10 = vmax.f32 %v1723_v32, 0.0  ;;  %v2095_v7 = vmax.f32 %v2041_v21, 0.0  ;;  %v1833_v32 = vadd.f32 %v1832_v11, %v4999_v36 }
 0x2b2   : > { %2557 = vmatpush.bf16.msra.mxu2 %v4953_v23  ;;  %2570 = vmatpush.bf16.msra.mxu3 %v2458_v40 }
 0x2b3   : > { %v5172_v53 = vpop.f32.mrf.mxu2  ;;  %v2426_v40 = vpack.c.bf16 %v2264_v16, %v2248_v10  ;;  %v1882_v16 = vadd.f32 %v5153_v17, %v4978_v58 }
 0x2b4   : > { %v5174_v8 = vpop.f32.mrf.mxu3 }
 0x2b5   : > { %2545 = vmatpush.bf16.msra.mxu1 %v4945_v9  ;;  %v5178_v57 = vpop.f32.mrf.mxu1 }
 0x2b6   : > { %2558 = vmatpush.bf16.msra.mxu2 %v4938_v35  ;;  %2571 = vmatpush.bf16.msra.mxu3 %v2442_v5  ;;  %v2042_v59 = vpop.f32.mrf.mxu0  ;;  %v5219_v5 = vperm.slane %v4962_v54, 6 }
 0x2b7   : > { %v2043_v23 = vadd.f32 %v2042_v59, %v5165_v12  ;;  %v2330_v59 = vmax.f32 %v1833_v32, 0.0 }
 0x2b9   : > { %v2111_v0 = vmax.f32 %v2043_v23, 0.0  ;;  %2546 = vmatpush.bf16.msra.mxu1 %v4933_v4 }
 0x2ba   : > { %2559 = vmatpush.bf16.msra.mxu2 %v4920_v24  ;;  %2572 = vmatpush.bf16.msra.mxu3 %v2426_v40  ;;  %v5198_v24 = vperm.slane %v4962_v54, 4 }
 0x2bb   : > { %v5184_v13 = vpack.c.bf16 %v2111_v0, %v2095_v7  ;;  %v5186_v9 = vpop.f32.mrf.mxu2 }
 0x2bc   : > { %v5188_v25 = vpop.f32.mrf.mxu3 }
 0x2bd   : > { %5486 = vst [vmem:[#allocation14_spill] sm:$0xff] %v5184_v13  ;;  %2547 = vmatpush.bf16.msra.mxu1 %v4897_v55  ;;  %v1898_v35 = vpop.f32.mrf.mxu1 }
 0x2be   : > { %2560 = vmatpush.bf16.msra.mxu2 %v4876_v20  ;;  %2573 = vmatpush.bf16.msra.mxu3 %v5100_v61  ;;  %v2045_v34 = vpop.f32.mrf.mxu0  ;;  %v5203_v20 = vperm.slane %v4962_v54, 5  ;;  %v1899_v4 = vadd.f32 %v1898_v35, %v5198_v24  ;;  %v1828_v54 = vadd.f32 %v5141_v63, %v4999_v36 }
 0x2bf   : > { %v2046_v60 = vadd.f32 %v2045_v34, %v5165_v12 }
 0x2c0   : > { %2513 = vmatmul.bf16.vlgmr.msrb.gmra.mxu1 %v5461_v50  ;;  %2526 = vmatmul.bf16.vlgmr.msrb.gmra.mxu2 %v5461_v50 }
 0x2c1   : > { %2548 = vmatpush.bf16.msra.mxu1 %v4851_v48  ;;  %2539 = vmatmul.bf16.vlgmr.msrb.gmra.mxu3 %v5461_v50  ;;  %v1784_v48 = vadd.f32 %v1783_v45, %v4992_v43  ;;  %v1782_v45 = vadd.f32 %v5149_v3, %v4992_v43  ;;  %v2127_v23 = vmax.f32 %v2046_v60, 0.0  ;;  %v2331_v3 = vmax.f32 %v1882_v16, 0.0 }
 0x2c2   : > { %2561 = vmatpush.bf16.msra.mxu2 %v4835_v51  ;;  %2574 = vmatpush.bf16.msra.mxu3 %v5078_v62  ;;  %v1826_v62 = vadd.f32 %v5135_v41, %v4999_v36  ;;  %v1831_v41 = vadd.f32 %v5151_v37, %v4999_v36  ;;  %v5487_v36 = vld [vmem:[#allocation11_spill] sm:$0xff] }
 0x2c3   : > { %v1947_v55 = vpop.f32.mrf.mxu2  ;;  %v2329_v10 = vmax.f32 %v1784_v48, 0.0  ;;  %v2313_v63 = vmax.f32 %v1782_v45, 0.0  ;;  %v2298_v48 = vmax.f32 %v1828_v54, 0.0 }
 0x2c4   : > { %v1996_v61 = vpop.f32.mrf.mxu3  ;;  %v1948_v37 = vadd.f32 %v1947_v55, %v5203_v20 }
 0x2c5   : > { %2549 = vmatpush.bf16.msra.mxu1 %v4825_v27  ;;  %v1900_v51 = vpop.f32.mrf.mxu1  ;;  %v1779_v27 = vadd.f32 %v5139_v52, %v4992_v43  ;;  %v1877_v43 = vadd.f32 %v5137_v31, %v4978_v58  ;;  %v1997_v7 = vadd.f32 %v1996_v61, %v5219_v5  ;;  %v2459_v32 = vpack.c.bf16 %v2329_v10, %v2313_v63 }
 0x2c6   : > { %2562 = vmatpush.bf16.msra.mxu2 %v4815_v18  ;;  %2575 = vmatpush.bf16.msra.mxu3 %v5058_v26  ;;  %v1901_v11 = vadd.f32 %v1900_v51, %v5198_v24  ;;  %v2047_v6 = vpop.f32.mrf.mxu0  ;;  %v1880_v18 = vadd.f32 %v5143_v2, %v4978_v58  ;;  %v2124_v26 = vmax.f32 %v1899_v4, 0.0  ;;  %v2314_v2 = vmax.f32 %v1831_v41, 0.0  ;;  %v5488_v51 = vld [vmem:[#allocation10_spill] sm:$0xff]  ;;  %v5489_v41 = vld [vmem:[#allocation9_spill] sm:$0xff] }
 0x2c7   : > { %v2048_v17 = vadd.f32 %v2047_v6, %v5165_v12  ;;  %v2297_v31 = vmax.f32 %v1779_v27, 0.0  ;;  %v2299_v61 = vmax.f32 %v1877_v43, 0.0  ;;  %v2125_v6 = vmax.f32 %v1948_v37, 0.0 }
 0x2c8   : > { %v2140_v21 = vmax.f32 %v1901_v11, 0.0  ;;  %v2315_v34 = vmax.f32 %v1880_v18, 0.0  ;;  %v2460_v60 = vpack.c.bf16 %v2330_v59, %v2314_v2  ;;  %v2281_v27 = vmax.f32 %v5208_v15, 0.0 }
 0x2c9   : > { %v2143_v52 = vmax.f32 %v2048_v17, 0.0  ;;  %2550 = vmatpush.bf16.msra.mxu1 %v4805_v39  ;;  %v1875_v39 = vadd.f32 %v5123_v29, %v4978_v58  ;;  %v2282_v17 = vmax.f32 %v1826_v62, 0.0  ;;  %v2126_v54 = vmax.f32 %v1997_v7, 0.0 }
 0x2ca   : > { %v5239_v40 = vpack.c.bf16 %v2140_v21, %v2124_v26  ;;  %2563 = vmatpush.bf16.msra.mxu2 %v5487_v36  ;;  %2576 = vmatpush.bf16.msra.mxu3 %v5034_v49  ;;  %v2461_v11 = vpack.c.bf16 %v2331_v3, %v2315_v34  ;;  %v2443_v59 = vpack.c.bf16 %v2297_v31, %v2281_v27  ;;  %v5494_v27 = vld [vmem:[#allocation3_spill] sm:$0xff] }
 0x2cb   : > { %v5244_v0 = vpack.c.bf16 %v2143_v52, %v2127_v23  ;;  %v1949_v35 = vpop.f32.mrf.mxu2  ;;  %v2283_v26 = vmax.f32 %v1875_v39, 0.0  ;;  %v2444_v23 = vpack.c.bf16 %v2298_v48, %v2282_v17  ;;  %v1865_v52 = vadd.f32 %v5085_v30, %v4978_v58 }
 0x2cc   : > { %v1950_v55 = vadd.f32 %v1949_v35, %v5203_v20  ;;  %v1998_v4 = vpop.f32.mrf.mxu3 }
 0x2cd   : > { %v1999_v49 = vadd.f32 %v1998_v4, %v5219_v5  ;;  %2551 = vmatpush.bf16.msra.mxu1 %v5488_v51  ;;  %v1903_v16 = vpop.f32.mrf.mxu1  ;;  %v2445_v15 = vpack.c.bf16 %v2299_v61, %v2283_v26  ;;  %v2219_v35 = vmax.f32 %v1865_v52, 0.0  ;;  %v5495_v26 = vld [vmem:[#allocation5_spill] sm:$0xff] }
 0x2ce   : > { %v2141_v45 = vmax.f32 %v1950_v55, 0.0  ;;  %2564 = vmatpush.bf16.msra.mxu2 %v5489_v41  ;;  %2577 = vmatpush.bf16.msra.mxu3 %v5004_v1  ;;  %v2050_v29 = vpop.f32.mrf.mxu0  ;;  %v1867_v1 = vadd.f32 %v5097_v56, %v4978_v58  ;;  %v1904_v43 = vadd.f32 %v1903_v16, %v5198_v24 }
 0x2cf   : > { %v2142_v18 = vmax.f32 %v1999_v49, 0.0  ;;  %v2051_v37 = vadd.f32 %v2050_v29, %v5165_v12 }
 0x2d0   : > { %v5254_v21 = vpack.c.bf16 %v2141_v45, %v2125_v6  ;;  %2552 = vmatmul.bf16.vlgmr.msra.gmra.mxu1 %v5461_v50  ;;  %v2235_v63 = vmax.f32 %v1867_v1, 0.0  ;;  %v2156_v39 = vmax.f32 %v1904_v43, 0.0  ;;  %v5493_v45 = vld [vmem:[#allocation13_spill] sm:$0xff]  ;;  %v5497_v1 = vld [vmem:[#allocation6_spill] sm:$0xff] }
 0x2d1   : > { %2583 = vmatpush.bf16.msrb.mxu1 %v2459_v32  ;;  %v5257_v10 = vpack.c.bf16 %v2142_v18, %v2126_v54  ;;  %2578 = vmatmul.bf16.vlgmr.msra.gmra.mxu3 %v5461_v50  ;;  %v2159_v30 = vmax.f32 %v2051_v37, 0.0 }
 0x2d2   : > { %2596 = vmatpush.bf16.msrb.mxu2 %v2460_v60  ;;  %5490 = vst [vmem:[#allocation11_spill] sm:$0xff] %v5254_v21  ;;  %2609 = vmatpush.bf16.msrb.mxu3 %v2461_v11  ;;  %v2413_v4 = vpack.c.bf16 %v2235_v63, %v2219_v35  ;;  %v5499_v63 = vld [vmem:[#allocation12_spill] sm:$0xff] }
 0x2d3   : > { %5491 = vst [vmem:[#allocation10_spill] sm:$0xff] %v5257_v10  ;;  %2565 = vmatmul.bf16.vlgmr.msra.gmra.mxu2 %v5461_v50  ;;  %v1952_v62 = vpop.f32.mrf.mxu2 }
 0x2d4   : > { %v2001_v3 = vpop.f32.mrf.mxu3  ;;  %v1953_v34 = vadd.f32 %v1952_v62, %v5203_v20 }
 0x2d5   : > { %2584 = vmatpush.bf16.msrb.mxu1 %v2443_v59  ;;  %v1905_v36 = vpop.f32.mrf.mxu1  ;;  %v2002_v48 = vadd.f32 %v2001_v3, %v5219_v5  ;;  %v5496_v59 = vld [vmem:[#allocation4_spill] sm:$0xff] }
 0x2d6   : > { %2597 = vmatpush.bf16.msrb.mxu2 %v2444_v23  ;;  %2610 = vmatpush.bf16.msrb.mxu3 %v2445_v15  ;;  %v1906_v2 = vadd.f32 %v1905_v36, %v5198_v24  ;;  %v2052_v7 = vpop.f32.mrf.mxu0  ;;  %v2157_v51 = vmax.f32 %v1953_v34, 0.0  ;;  %v5498_v36 = vld [vmem:[#allocation7_spill] sm:$0xff] }
 0x2d7   : > { %v2053_v56 = vadd.f32 %v2052_v7, %v5165_v12  ;;  %v2158_v11 = vmax.f32 %v2002_v48, 0.0  ;;  %v5500_v7 = vld [vmem:[#allocation8_spill] sm:$0xff] }
 0x2d8   : > { %v2172_v58 = vmax.f32 %v1906_v2, 0.0 }
 0x2d9   : > { %2585 = vmatpush.bf16.msrb.mxu1 %v5127_v38  ;;  %v2175_v31 = vmax.f32 %v2053_v56, 0.0 }
 0x2da   : > { %2598 = vmatpush.bf16.msrb.mxu2 %v5131_v46  ;;  %2611 = vmatpush.bf16.msrb.mxu3 %v5119_v33  ;;  %v5273_v55 = vpack.c.bf16 %v2172_v58, %v2156_v39 }
 0x2db   : > { %v5276_v32 = vpack.c.bf16 %v2175_v31, %v2159_v30  ;;  %v1954_v38 = vpop.f32.mrf.mxu2 }
 0x2dc   : > { %v1955_v46 = vadd.f32 %v1954_v38, %v5203_v20  ;;  %v2003_v33 = vpop.f32.mrf.mxu3 }
 0x2dd   : > { %2586 = vmatpush.bf16.msrb.mxu1 %v5109_v14  ;;  %v2004_v60 = vadd.f32 %v2003_v33, %v5219_v5  ;;  %v1908_v49 = vpop.f32.mrf.mxu1 }
 0x2de   : > { %2599 = vmatpush.bf16.msrb.mxu2 %v5113_v22  ;;  %2612 = vmatpush.bf16.msrb.mxu3 %v2413_v4  ;;  %v2173_v16 = vmax.f32 %v1955_v46, 0.0  ;;  %v2055_v61 = vpop.f32.mrf.mxu0  ;;  %v1909_v29 = vadd.f32 %v1908_v49, %v5198_v24 }
 0x2df   : > { %v2174_v6 = vmax.f32 %v2004_v60, 0.0 }
 0x2e0   : > { %v5284_v14 = vpack.c.bf16 %v2173_v16, %v2157_v51 }
 0x2e1   : > { %2587 = vmatpush.bf16.msrb.mxu1 %v5089_v42  ;;  %v5287_v22 = vpack.c.bf16 %v2174_v6, %v2158_v11  ;;  %v2056_v42 = vadd.f32 %v2055_v61, %v5165_v12 }
 0x2e2   : > { %2600 = vmatpush.bf16.msrb.mxu2 %v5093_v19  ;;  %2613 = vmatpush.bf16.msrb.mxu3 %v5081_v47 }
 0x2e3   : > { %5492 = vst [vmem:[#allocation9_spill] sm:$0xff] %v5287_v22  ;;  %v1957_v41 = vpop.f32.mrf.mxu2  ;;  %v2191_v15 = vmax.f32 %v2056_v42, 0.0 }
 0x2e4   : > { %v2006_v17 = vpop.f32.mrf.mxu3  ;;  %v1958_v52 = vadd.f32 %v1957_v41, %v5203_v20 }
 0x2e5   : > { %2588 = vmatpush.bf16.msrb.mxu1 %v5067_v28  ;;  %v1910_v54 = vpop.f32.mrf.mxu1  ;;  %v2188_v28 = vmax.f32 %v1909_v29, 0.0  ;;  %v2007_v3 = vadd.f32 %v2006_v17, %v5219_v5 }
 0x2e6   : > { %2601 = vmatpush.bf16.msrb.mxu2 %v5493_v45  ;;  %2614 = vmatpush.bf16.msrb.mxu3 %v5494_v27  ;;  %v1911_v19 = vadd.f32 %v1910_v54, %v5198_v24  ;;  %v2057_v18 = vpop.f32.mrf.mxu0  ;;  %v2189_v30 = vmax.f32 %v1958_v52, 0.0 }
 0x2e7   : > { %v2058_v47 = vadd.f32 %v2057_v18, %v5165_v12  ;;  %v2190_v4 = vmax.f32 %v2007_v3, 0.0 }
 0x2e8   : > { %v2204_v23 = vmax.f32 %v1911_v19, 0.0 }
 0x2e9   : > { %2589 = vmatpush.bf16.msrb.mxu1 %v5495_v26  ;;  %v2207_v62 = vmax.f32 %v2058_v47, 0.0 }
 0x2ea   : > { %2602 = vmatpush.bf16.msrb.mxu2 %v5496_v59  ;;  %2615 = vmatpush.bf16.msrb.mxu3 %v5497_v1  ;;  %v5300_v43 = vpack.c.bf16 %v2204_v23, %v2188_v28 }
 0x2eb   : > { %v5303_v37 = vpack.c.bf16 %v2207_v62, %v2191_v15  ;;  %v1959_v2 = vpop.f32.mrf.mxu2 }
 0x2ec   : > { %v1960_v56 = vadd.f32 %v1959_v2, %v5203_v20  ;;  %v2008_v35 = vpop.f32.mrf.mxu3 }
 0x2ed   : > { %2590 = vmatpush.bf16.msrb.mxu1 %v5498_v36  ;;  %v2009_v39 = vadd.f32 %v2008_v35, %v5219_v5  ;;  %v1913_v58 = vpop.f32.mrf.mxu1 }
 0x2ee   : > { %2603 = vmatpush.bf16.msrb.mxu2 %v5499_v63  ;;  %2616 = vmatpush.bf16.msrb.mxu3 %v5500_v7  ;;  %v2205_v31 = vmax.f32 %v1960_v56, 0.0  ;;  %v2060_v34 = vpop.f32.mrf.mxu0  ;;  %v5336_v2 = vadd.f32 %v1913_v58, %v5198_v24 }
 0x2ef   : > { %v2206_v48 = vmax.f32 %v2009_v39, 0.0  ;;  %v5339_v7 = vadd.f32 %v2060_v34, %v5165_v12 }
 0x2f0   : > { %2591 = vmatmul.bf16.vlgmr.msrb.gmra.mxu1 %v5461_v50  ;;  %v5313_v38 = vpack.c.bf16 %v2205_v31, %v2189_v30 }
 0x2f1   : > { %2604 = vmatmul.bf16.vlgmr.msrb.gmra.mxu2 %v5461_v50  ;;  %2617 = vmatmul.bf16.vlgmr.msrb.gmra.mxu3 %v5461_v50  ;;  %v5315_v46 = vpack.c.bf16 %v2206_v48, %v2190_v4 }
 0x2f3   : > { %v5317_v33 = vpop.f32.mrf.mxu2 }
 0x2f4   : > { %v5319_v60 = vpop.f32.mrf.mxu3 }
 0x2f5   : > { %v1915_v49 = vpop.f32.mrf.mxu1 }
 0x2f6   : > { %v2062_v51 = vpop.f32.mrf.mxu0  ;;  %v5344_v30 = vadd.f32 %v1915_v49, %v5198_v24 }
 0x2f7   : > { %v5347_v31 = vadd.f32 %v2062_v51, %v5165_v12 }
 0x2fb   : > { %v5321_v16 = vpop.f32.mrf.mxu2 }
 0x2fc   : > { %v5323_v61 = vpop.f32.mrf.mxu3 }
 0x2fd   : > { %v1918_v11 = vpop.f32.mrf.mxu1 }
 0x2fe   : > { %v2065_v6 = vpop.f32.mrf.mxu0  ;;  %v1919_v10 = vadd.f32 %v1918_v11, %v5198_v24 }
 0x303   : > { %v5325_v45 = vpop.f32.mrf.mxu2 }
 0x304   : > { %v5327_v41 = vpop.f32.mrf.mxu3 }
 0x305   : > { %v1920_v29 = vpop.f32.mrf.mxu1 }
 0x306   : > { %v2067_v27 = vpop.f32.mrf.mxu0  ;;  %v1921_v58 = vadd.f32 %v1920_v29, %v5198_v24 }
 0x30b   : > { %v5329_v17 = vpop.f32.mrf.mxu2 }
 0x30c   : > { %v5331_v42 = vpop.f32.mrf.mxu3 }
 0x30d   : > { %v1923_v54 = vpop.f32.mrf.mxu1 }
 0x30e   : > { %v2070_v19 = vpop.f32.mrf.mxu0  ;;  %v1924_v34 = vadd.f32 %v1923_v54, %v5198_v24 }
 0x310   : > { %v2284_v22 = vmax.f32 %v1924_v34, 0.0 }
 0x313   : > { %v1972_v18 = vpop.f32.mrf.mxu2 }
 0x314   : > { %v2021_v47 = vpop.f32.mrf.mxu3 }
 0x315   : > { %v1925_v26 = vpop.f32.mrf.mxu1 }
 0x316   : > { %v2072_v59 = vpop.f32.mrf.mxu0  ;;  %v1926_v56 = vadd.f32 %v1925_v26, %v5198_v24  ;;  %v2068_v26 = vadd.f32 %v2067_v27, %v5165_v12 }
 0x317   : > { %v2073_v4 = vadd.f32 %v2072_v59, %v5165_v12 }
 0x318   : > { %v2300_v51 = vmax.f32 %v1926_v56, 0.0  ;;  %v2271_v11 = vmax.f32 %v2068_v26, 0.0 }
 0x319   : > { %v2303_v13 = vmax.f32 %v2073_v4, 0.0  ;;  %v2022_v4 = vadd.f32 %v2021_v47, %v5219_v5 }
 0x31b   : > { %v1974_v28 = vpop.f32.mrf.mxu2 }
 0x31c   : > { %v2023_v23 = vpop.f32.mrf.mxu3  ;;  %v1975_v27 = vadd.f32 %v1974_v28, %v5203_v20 }
 0x31d   : > { %v1928_v1 = vpop.f32.mrf.mxu1 }
 0x31e   : > { %v2075_v15 = vpop.f32.mrf.mxu0  ;;  %v1929_v52 = vadd.f32 %v1928_v1, %v5198_v24  ;;  %v2301_v26 = vmax.f32 %v1975_v27, 0.0 }
 0x31f   : > { %v2076_v36 = vadd.f32 %v2075_v15, %v5165_v12 }
 0x320   : > { %v2316_v1 = vmax.f32 %v1929_v52, 0.0 }
 0x321   : > { %v2319_v50 = vmax.f32 %v2076_v36, 0.0 }
 0x323   : > { %v1977_v62 = vpop.f32.mrf.mxu2 }
 0x324   : > { %v2026_v3 = vpop.f32.mrf.mxu3  ;;  %v1978_v21 = vadd.f32 %v1977_v62, %v5203_v20  ;;  %v2024_v62 = vadd.f32 %v2023_v23, %v5219_v5 }
 0x325   : > { %v1930_v63 = vpop.f32.mrf.mxu1  ;;  %v2027_v29 = vadd.f32 %v2026_v3, %v5219_v5 }
 0x326   : > { %v1931_v35 = vadd.f32 %v1930_v63, %v5198_v24  ;;  %v2077_v39 = vpop.f32.mrf.mxu0  ;;  %v2071_v63 = vadd.f32 %v2070_v19, %v5165_v12 }
 0x327   : > { %v2078_v48 = vadd.f32 %v2077_v39, %v5165_v12  ;;  %v2066_v39 = vadd.f32 %v2065_v6, %v5165_v12  ;;  %v1973_v12 = vadd.f32 %v1972_v18, %v5203_v20  ;;  %v2446_v6 = vpack.c.bf16 %v2300_v51, %v2284_v22 }
 0x328   : > { %v2332_v15 = vmax.f32 %v1931_v35, 0.0  ;;  %v2268_v35 = vmax.f32 %v1921_v58, 0.0  ;;  %v2287_v56 = vmax.f32 %v2071_v63, 0.0  ;;  %v2318_v28 = vmax.f32 %v2027_v29, 0.0 }
 0x329   : > { %v2335_v49 = vmax.f32 %v2078_v48, 0.0  ;;  %v2255_v23 = vmax.f32 %v2066_v39, 0.0  ;;  %v2302_v18 = vmax.f32 %v2024_v62, 0.0 }
 0x32a   : > { %v2462_v59 = vpack.c.bf16 %v2332_v15, %v2316_v1  ;;  %v2449_v58 = vpack.c.bf16 %v2303_v13, %v2287_v56  ;;  %v2252_v1 = vmax.f32 %v1919_v10, 0.0  ;;  %v1970_v15 = vadd.f32 %v5329_v17, %v5203_v20 }
 0x32b   : > { %v2465_v54 = vpack.c.bf16 %v2335_v49, %v2319_v50  ;;  %v1979_v52 = vpop.f32.mrf.mxu2  ;;  %v2317_v50 = vmax.f32 %v1978_v21, 0.0  ;;  %v2019_v49 = vadd.f32 %v5331_v42, %v5219_v5  ;;  %v2236_v21 = vmax.f32 %v5344_v30, 0.0 }
 0x32c   : > { %v1980_v19 = vadd.f32 %v1979_v52, %v5203_v20  ;;  %v2028_v36 = vpop.f32.mrf.mxu3  ;;  %2622 = vmatpush.bf16.msrb.mxu0 %v2462_v59  ;;  %v1968_v13 = vadd.f32 %v5325_v45, %v5203_v20  ;;  %v2430_v47 = vpack.c.bf16 %v2268_v35, %v2252_v1  ;;  %v2285_v10 = vmax.f32 %v1973_v12, 0.0 }
 0x32d   : > { %v2029_v48 = vadd.f32 %v2028_v36, %v5219_v5  ;;  %2661 = vmatpush.bf16.msra.mxu3 %v2465_v54  ;;  %v5372_v51 = vpop.f32.mrf.mxu1  ;;  %v2239_v17 = vmax.f32 %v5347_v31, 0.0  ;;  %v2017_v59 = vadd.f32 %v5327_v41, %v5219_v5  ;;  %v2433_v39 = vpack.c.bf16 %v2271_v11, %v2255_v23 }
 0x32e   : > { %v2333_v3 = vmax.f32 %v1980_v19, 0.0  ;;  %v2286_v42 = vmax.f32 %v2022_v4, 0.0  ;;  %v2220_v30 = vmax.f32 %v5336_v2, 0.0  ;;  %v1965_v45 = vadd.f32 %v5321_v16, %v5203_v20 }
 0x32f   : > { %v2334_v34 = vmax.f32 %v2029_v48, 0.0  ;;  %v2269_v54 = vmax.f32 %v1970_v15, 0.0  ;;  %v2447_v52 = vpack.c.bf16 %v2301_v26, %v2285_v10  ;;  %v2223_v31 = vmax.f32 %v5339_v7, 0.0 }
 0x330   : > { %v2463_v63 = vpack.c.bf16 %v2333_v3, %v2317_v50  ;;  %2623 = vmatpush.bf16.msrb.mxu0 %v2446_v6  ;;  %v2014_v41 = vadd.f32 %v5323_v61, %v5219_v5  ;;  %v2270_v27 = vmax.f32 %v2019_v49, 0.0  ;;  %v2448_v19 = vpack.c.bf16 %v2302_v18, %v2286_v42  ;;  %v5504_v49 = vld [vmem:[#allocation10_spill] sm:$0xff] }
 0x331   : > { %v2464_v22 = vpack.c.bf16 %v2334_v34, %v2318_v28  ;;  %2662 = vmatpush.bf16.msra.mxu3 %v2449_v58  ;;  %v1963_v36 = vadd.f32 %v5317_v33, %v5203_v20  ;;  %v2414_v2 = vpack.c.bf16 %v2236_v21, %v2220_v30  ;;  %v2253_v11 = vmax.f32 %v1968_v13, 0.0 }
 0x332   : > { %2635 = vmatpush.bf16.msra.mxu1 %v2463_v63  ;;  %v2012_v16 = vadd.f32 %v5319_v60, %v5219_v5  ;;  %v2417_v56 = vpack.c.bf16 %v2239_v17, %v2223_v31  ;;  %v2254_v62 = vmax.f32 %v2017_v59, 0.0  ;;  %v2237_v48 = vmax.f32 %v1965_v45, 0.0 }
 0x333   : > { %2648 = vmatpush.bf16.msra.mxu2 %v2464_v22  ;;  %v5377_v29 = vpop.f32.mrf.mxu2  ;;  %v2431_v7 = vpack.c.bf16 %v2269_v54, %v2253_v11  ;;  %v2238_v12 = vmax.f32 %v2014_v41, 0.0  ;;  %v2221_v6 = vmax.f32 %v1963_v36, 0.0  ;;  %v1896_v28 = vadd.f32 %v5178_v57, %v5198_v24 }
 0x334   : > { %2624 = vmatpush.bf16.msrb.mxu0 %v2430_v47  ;;  %v5382_v35 = vpop.f32.mrf.mxu3  ;;  %v2432_v61 = vpack.c.bf16 %v2270_v27, %v2254_v62  ;;  %v2222_v3 = vmax.f32 %v2012_v16, 0.0  ;;  %v1894_v34 = vadd.f32 %v5158_v44, %v5198_v24  ;;  %v1945_v57 = vadd.f32 %v5186_v9, %v5203_v20 }
 0x335   : > { %2663 = vmatpush.bf16.msra.mxu3 %v2433_v39  ;;  %v2477_v50 = vpop.f32.mrf.mxu1  ;;  %v2415_v4 = vpack.c.bf16 %v2237_v48, %v2221_v6  ;;  %v2108_v1 = vmax.f32 %v1896_v28, 0.0  ;;  %v1994_v44 = vadd.f32 %v5188_v25, %v5219_v5  ;;  %v1943_v24 = vadd.f32 %v5172_v53, %v5203_v20  ;;  %v5503_v25 = vld [vmem:[#allocation11_spill] sm:$0xff] }
 0x336   : > { %2636 = vmatpush.bf16.msra.mxu1 %v2447_v52  ;;  %v2416_v60 = vpack.c.bf16 %v2238_v12, %v2222_v3  ;;  %v2109_v9 = vmax.f32 %v1945_v57, 0.0  ;;  %v5505_v53 = vmov 1065369472   ;;  %v2690_v18 = vrot.slane %v5377_v29, 7  ;;  %v2336_v52 = vld [vmem:[#allocation2] sm:$0xff] }
 0x337   : > { %2649 = vmatpush.bf16.msra.mxu2 %v2448_v19  ;;  %v2093_v63 = vmax.f32 %v1943_v24, 0.0  ;;  %v2691_v22 = vrot.slane %v5382_v35, 6 }
 0x338   : > { %2625 = vmatpush.bf16.msrb.mxu0 %v2414_v2  ;;  %v2705_v17 = vsel %vm2704_vm1, %v5372_v51, %v2690_v18 }
 0x339   : > { %2664 = vmatpush.bf16.msra.mxu3 %v2417_v56 }
 0x33a   : > { %2637 = vmatpush.bf16.msra.mxu1 %v2431_v7 }
 0x33b   : > { %2650 = vmatpush.bf16.msra.mxu2 %v2432_v61  ;;  %v2490_v33 = vpop.f32.mrf.mxu2 }
 0x33c   : > { %2626 = vmatpush.bf16.msrb.mxu0 %v5300_v43  ;;  %v2503_v58 = vpop.f32.mrf.mxu3 }
 0x33d   : > { %2665 = vmatpush.bf16.msra.mxu3 %v5303_v37  ;;  %v2514_v43 = vpop.f32.mrf.mxu1  ;;  %v2092_v37 = vmax.f32 %v1894_v34, 0.0 }
 0x33e   : > { %2638 = vmatpush.bf16.msra.mxu1 %v2415_v4  ;;  %v2692_v21 = vrot.slane %v2514_v43, 5 }
 0x33f   : > { %2651 = vmatpush.bf16.msra.mxu2 %v2416_v60 }
 0x340   : > { %2627 = vmatpush.bf16.msrb.mxu0 %v5273_v55  ;;  %v2350_v55 = vpack.c.bf16 %v2108_v1, %v2092_v37  ;;  %v2707_v59 = vsel %vm2706_vm2, %v2691_v22, %v2692_v21 }
 0x341   : > { %2666 = vmatpush.bf16.msra.mxu3 %v5276_v32  ;;  %v1992_v32 = vadd.f32 %v5174_v8, %v5219_v5  ;;  %v2709_v54 = vsel %vm2708_vm4, %v2705_v17, %v2707_v59 }
 0x342   : > { %2639 = vmatpush.bf16.msra.mxu1 %v5313_v38  ;;  %v5501_v38 = vld [vmem:[#allocation9_spill] sm:$0xff] }
 0x343   : > { %2652 = vmatpush.bf16.msra.mxu2 %v5315_v46  ;;  %v2527_v15 = vpop.f32.mrf.mxu2  ;;  %v5502_v46 = vld [vmem:[#allocation14_spill] sm:$0xff]  ;;  %v2094_v23 = vmax.f32 %v1992_v32, 0.0 }
 0x344   : > { %2628 = vmatpush.bf16.msrb.mxu0 %v5239_v40  ;;  %v2540_v26 = vpop.f32.mrf.mxu3  ;;  %v2110_v40 = vmax.f32 %v1994_v44, 0.0  ;;  %v2693_v13 = vrot.slane %v2527_v15, 4  ;;  %v2337_v44 = vld [vmem:[#allocation2 + $0x8] sm:$0xff] }
 0x345   : > { %2667 = vmatpush.bf16.msra.mxu3 %v5244_v0  ;;  %v2516_v0 = vpop.f32.mrf.mxu1  ;;  %v2694_v47 = vrot.slane %v2540_v26, 3 }
 0x346   : > { %2640 = vmatpush.bf16.msra.mxu1 %v5284_v14  ;;  %v2351_v14 = vpack.c.bf16 %v2109_v9, %v2093_v63  ;;  %v2352_v5 = vpack.c.bf16 %v2110_v40, %v2094_v23 }
 0x347   : > { %2653 = vmatpush.bf16.msra.mxu2 %v5501_v38  ;;  %v2711_v30 = vsel %vm2710_vm3, %v2693_v13, %v2694_v47 }
 0x348   : > { %2629 = vmatpush.bf16.msrb.mxu0 %v2350_v55 }
 0x349   : > { %2668 = vmatpush.bf16.msra.mxu3 %v5502_v46 }
 0x34a   : > { %2641 = vmatpush.bf16.msra.mxu1 %v5503_v25 }
 0x34b   : > { %2654 = vmatpush.bf16.msra.mxu2 %v5504_v49  ;;  %2630 = vmatmul.bf16.vlgmr.msrb.gmra.mxu0 %v5505_v53  ;;  %v2529_v20 = vpop.f32.mrf.mxu2 }
 0x34c   : > { %2669 = vmatmul.bf16.vlgmr.msra.gmra.mxu3 %v5505_v53  ;;  %v2542_v8 = vpop.f32.mrf.mxu3 }
 0x34d   : > { %v2553_v10 = vpop.f32.mrf.mxu1 }
 0x34e   : > { %2642 = vmatpush.bf16.msra.mxu1 %v2351_v14  ;;  %v2695_v39 = vrot.slane %v2553_v10, 2 }
 0x34f   : > { %2655 = vmatpush.bf16.msra.mxu2 %v2352_v5 }
 0x351   : > { %2643 = vmatmul.bf16.vlgmr.msra.gmra.mxu1 %v5505_v53 }
 0x352   : > { %2656 = vmatmul.bf16.vlgmr.msra.gmra.mxu2 %v5505_v53 }
 0x354   : > { %v2579_v29 = vpop.f32.mrf.mxu3 }
 0x355   : > { %v2555_v27 = vpop.f32.mrf.mxu1 }
 0x356   : > { %v2566_v42 = vpop.f32.mrf.mxu2 }
 0x357   : > { %v2696_v45 = vrot.slane %v2566_v42, 1 }
 0x359   : > { %v2713_v35 = vsel %vm2712_vm5, %v2695_v39, %v2696_v45 }
 0x35a   : > { %v2715_v31 = vsel %vm2714_vm6, %v2711_v30, %v2713_v35 }
 0x35b   : > { %v2717_v51 = vsel %vm2716_vm7, %v2709_v54, %v2715_v31 }
 0x35c   : > { %v2727_v41 = vadd.f32 %v2717_v51, %v2336_v52  ;;  %v2581_v36 = vpop.f32.mrf.mxu3 }
 0x35e   : > { %2729 = vst [vmem:[#allocation2] sm:$0xff] %v2727_v41  ;;  %v2568_v19 = vpop.f32.mrf.mxu2 }
 0x36d   : > { %v2592_v2 = vpop.f32.mrf.mxu1 }
 0x36e   : > { %v2697_v11 = vrot.slane %v2592_v2, 7 }
 0x370   : > { %v2718_v16 = vsel %vm2704_vm1, %v2579_v29, %v2697_v11 }
 0x374   : > { %v2605_v56 = vpop.f32.mrf.mxu2  ;;  %v2618_v48 = vpop.f32.mrf.mxu3 }
 0x375   : > { %v2698_v62 = vrot.slane %v2605_v56, 6  ;;  %v2699_v7 = vrot.slane %v2618_v48, 5  ;;  %v2594_v12 = vpop.f32.mrf.mxu1 }
 0x377   : > { %v2719_v61 = vsel %vm2706_vm2, %v2698_v62, %v2699_v7 }
 0x378   : > { %v2720_v6 = vsel %vm2708_vm4, %v2718_v16, %v2719_v61 }
 0x37c   : > { %v2607_v50 = vpop.f32.mrf.mxu2  ;;  %v2620_v3 = vpop.f32.mrf.mxu3 }
 0x3c8   : > { %v2631_v33 = vpop.f32.mrf.mxu0 }
 0x3c9   : > { %v2700_v28 = vrot.slane %v2631_v33, 4 }
 0x3ce   : > { %v2644_v4 = vpop.f32.mrf.mxu1 }
 0x3cf   : > { %v2670_v58 = vpop.f32.mrf.mxu3  ;;  %v2701_v34 = vrot.slane %v2644_v4, 3 }
 0x3d0   : > { %v2633_v60 = vpop.f32.mrf.mxu0  ;;  %v2703_v1 = vrot.slane %v2670_v58, 1 }
 0x3d1   : > { %v2721_v15 = vsel %vm2710_vm3, %v2700_v28, %v2701_v34 }
 0x3d5   : > { %v2657_v43 = vpop.f32.mrf.mxu2 }
 0x3d6   : > { %v2702_v37 = vrot.slane %v2657_v43, 2  ;;  %v2646_v57 = vpop.f32.mrf.mxu1 }
 0x3d7   : > { %v2672_v26 = vpop.f32.mrf.mxu3 }
 0x3d8   : > { %v2722_v24 = vsel %vm2712_vm5, %v2702_v37, %v2703_v1 }
 0x3d9   : > { %v2723_v55 = vsel %vm2714_vm6, %v2721_v15, %v2722_v24  ;;  %2734 = sbr.rel (%p3427_p8) target bundleno = 1000 (0x3e8), region = 48 }
 0x3da   : > { %v2724_v32 = vsel %vm2716_vm7, %v2720_v6, %v2723_v55 }
 0x3db   : > { %v2728_v38 = vadd.f32 %v2724_v32, %v2337_v44 }
 0x3dd   : > { %2730 = vst [vmem:[#allocation2 + $0x8] sm:$0xff] %v2728_v38  ;;  %v2659_v9 = vpop.f32.mrf.mxu2 }
 0x3de   : > { %v2735_v40 = vld [vmem:[#allocation2] sm:$0xff] }
 0x3df   : > { %v2737_v63 = vmul.f32 0.00390625, %v2735_v40 }
 0x3e1   : > { %2739 = vst [vmem:[%s3719_s6] sm:$0xff] %v2737_v63 }
 0x3e4   : > { %v2736_v46 = vld [vmem:[#allocation2 + $0x8] sm:$0xff] }
 0x3e5   : > { %v2738_v25 = vmul.f32 0.00390625, %v2736_v46 }
 0x3e7   : > { %2740 = vst [vmem:[%s3719_s6 + $0x8] sm:$0xff] %v2738_v25 }
 0x3e8 PF: > { %s15_s22 = sadd.s32 1, %s3649_s22   ;;  %s5506_s18 = smov %s3641_s20 }
 0x3e9   : > { %p12_p9 = scmp.ge.s32.totalorder %s15_s22, 6   ;;  %s5507_s19 = smov %s3645_s21 }
 0x3ea   : > { %s5508_s20 = smov %s5511_s23  ;;  %s5509_s21 = smov %s5515_s24 }
 0x3eb   :  { %14 = sbr.rel (!%p12_p9) target bundleno = 3 (0x3), region = 84 }

</bundles_post_ra>
